<compile_context>
chip_gen: v6e
topology: v6e:2x2x1
jax: 0.10.0
libtpu: 0.0.40
codegen_flags: <defaults>
</compile_context>

<pallas_src>
import jax
import jax.numpy as jnp
from jax import lax
from jax.experimental import pallas as pl
from jax.experimental.pallas import tpu as pltpu

LEAKY_SLOPE = 0.01   # nn.LeakyReLU default negative_slope
KERNEL_SIZE = 3
PADDING = 1
CP = 128             # lane-padded channel width (= max out_channels); tap stride in the im2col


def _fused_cnn1d_kernel(x_ref, w_ref, brow_ref, bcol_ref, o_ref, pad_ref):
    """Fused 3x [Conv1d(k=3, s=1, 'same') + folded BN + LeakyReLU], channels-last in VMEM.

    x_ref:    (N, L, C_in)      channels-last input
    w_ref:    (3, CP, 3*CP)     packed folded weights: w[l, co, k*CP + ci] = W_l[co, ci, k]*scale_l[co]
    brow_ref: (2, CP)           folded biases for layers 1..2 (row broadcast form)
    bcol_ref: (CP, 1)           folded bias for the last layer (column broadcast form)
    o_ref:    (N, CP, L)        NCL output, written directly (no transpose op anywhere)
    pad_ref:  (N, L+2, CP)      zero-haloed staging scratch (rows 0 / L+1 stay zero => 'same' pad)
    """
    N, Lp2, cp = pad_ref.shape
    L = Lp2 - 2 * PADDING
    c_in = x_ref.shape[-1]
    n_layers = w_ref.shape[0]
    dn = (((1,), (1,)), ((), ()))   # contract the minor dim of BOTH operands (MXU-native A @ B^T)

    # Single memset: halo rows 0 / L+1 give the conv's zero padding for every layer (all CP lanes,
    # since deeper layers read the full width), and the interior zeros lane-pad the c_in(=4)
    # channel input up to CP lanes.  Pad lanes always hit zero weight columns, so they are inert.
    pad_ref[...] = jnp.zeros_like(pad_ref)
    pad_ref[:, PADDING:PADDING + L, :c_in] = x_ref[...]

    def im2col(center):
        # (N, L, 3*CP): tap k at lane offset k*CP holds x[l + k - 1]; offsets are 128-aligned so
        # the lane concat is the cheap aligned case.
        prev = pad_ref[:, 0:L, :]          # x[l-1]  (row 0    = zero halo)
        nxt = pad_ref[:, 2:L + 2, :]       # x[l+1]  (row L+1  = zero halo)
        return jnp.concatenate([prev, center, nxt], axis=-1)

    # Layers 1..n-1: one matmul each; the result stays channels-last (lane-dense) and is restaged
    # full-lane into the halo buffer so the next layer's shifted taps can read it.
    center = pad_ref[:, PADDING:PADDING + L, :]   # lane-padded layer-1 input
    for l in range(n_layers - 1):
        col = im2col(center).reshape(N * L, 3 * cp)
        h = lax.dot_general(col, w_ref[l], dn, preferred_element_type=jnp.float32)
        h = h + brow_ref[l:l + 1, :]
        h = jnp.where(h > 0, h, LEAKY_SLOPE * h)              # LeakyReLU
        center = h.reshape(N, L, cp)
        pad_ref[:, PADDING:PADDING + L, :] = center           # full-lane restage (halo stays zero)

    # Last layer: weight on the LHS so each batch's result is (C_out, L) -> direct NCL store.
    col = im2col(center)
    w_last = w_ref[n_layers - 1]
    for n in range(N):                                        # N is tiny & static -> unrolled
        h = lax.dot_general(w_last, col[n], dn, preferred_element_type=jnp.float32)
        h = h + bcol_ref[...]
        o_ref[n, :, :] = jnp.where(h > 0, h, LEAKY_SLOPE * h).astype(o_ref.dtype)


def pack_params(params, eps=1e-5):
    """Fold eval-mode BatchNorm (+ conv bias) into the conv weights ONCE, and pack everything into
    MXU/DMA-friendly operands (done outside the jitted forward; review items 1/4/6).

    Returns:
      w_packed: (n_layers, CP, 3*CP) f32   w_packed[l, co, k*CP + ci] = W_l[co, ci, k] * scale_l[co]
      b_row:    (n_layers-1, CP)     f32   folded biases for all but the last layer (row broadcast)
      b_col:    (CP, 1)              f32   folded bias for the last layer (column broadcast)
    """
    n_layers = len(params)
    w_packed = jnp.zeros((n_layers, CP, KERNEL_SIZE * CP), jnp.float32)
    biases = []
    for l, p in enumerate(params):
        c_out, c_in, _ = p["w"].shape
        scale = p["gamma"] / jnp.sqrt(p["var"] + eps)                  # (C_out,)
        bias = (p["b"] - p["mean"]) * scale + p["beta"]                # (C_out,)
        wf = p["w"] * scale[:, None, None]                             # (C_out, C_in, K)
        for k in range(KERNEL_SIZE):
            w_packed = w_packed.at[l, :c_out, k * CP:k * CP + c_in].set(wf[:, :, k])
        biases.append(jnp.zeros((CP,), jnp.float32).at[:c_out].set(bias))
    b_row = jnp.stack(biases[:-1])
    b_col = biases[-1][:, None]
    return w_packed, b_row, b_col


def cnn1d_forward(x, w_packed, b_row, b_col, c_out_last=128):
    """Pallas forward for CNN1D. x: (N, C_in, L) -> (N, out_channels[-1], L) (NCL, like PyTorch)."""
    N, C_in, L = x.shape
    # Tiny (512 B) channels-last transpose; stays inside the same jit as the kernel call.
    x_nlc = jnp.transpose(x, (0, 2, 1))

    n_layers = w_packed.shape[0]
    flops = 2 * N * L * n_layers * 3 * CP * CP            # padded MXU work actually issued
    bytes_accessed = 4 * (x.size + w_packed.size + b_row.size + b_col.size + N * CP * L)

    out = pl.pallas_call(
        _fused_cnn1d_kernel,
        out_shape=jax.ShapeDtypeStruct((N, CP, L), jnp.float32),
        in_specs=[pl.BlockSpec(memory_space=pltpu.MemorySpace.VMEM)] * 4,
        out_specs=pl.BlockSpec(memory_space=pltpu.MemorySpace.VMEM),
        scratch_shapes=[pltpu.VMEM((N, L + 2 * PADDING, CP), jnp.float32)],
        cost_estimate=pl.CostEstimate(flops=int(flops), transcendentals=0,
                                      bytes_accessed=int(bytes_accessed)),
    )(x_nlc, w_packed, b_row, b_col)

    # NOTE: for large batches add a leading "parallel" grid axis over N
    # (compiler_params=pltpu.CompilerParams(dimension_semantics=("parallel",))) to use both
    # TensorCores on v7x; at N=2 a grid would only add per-step pipeline overhead.
    if c_out_last != CP:
        out = out[:, :c_out_last, :]
    return out


def init_params(key, in_channels, out_channels):
    """Deterministic synthetic parameters matching the PyTorch module's shapes."""
    params = []
    c_prev = in_channels
    for i, c_out in enumerate(out_channels):
        ks = jax.random.split(jax.random.fold_in(key, i), 6)
        w = jax.random.normal(ks[0], (c_out, c_prev, KERNEL_SIZE), jnp.float32) * 0.1
        b = jax.random.normal(ks[1], (c_out,), jnp.float32) * 0.1
        gamma = 1.0 + 0.1 * jax.random.normal(ks[2], (c_out,), jnp.float32)
        beta = 0.1 * jax.random.normal(ks[3], (c_out,), jnp.float32)
        running_mean = 0.1 * jax.random.normal(ks[4], (c_out,), jnp.float32)
        running_var = 1.0 + 0.1 * jnp.abs(jax.random.normal(ks[5], (c_out,), jnp.float32))
        params.append(dict(w=w, b=b, gamma=gamma, beta=beta, mean=running_mean, var=running_var))
        c_prev = c_out
    return params


def cnn1d_reference(x, params, eps=1e-5):
    """Pure-JAX reference (NCL conv via lax.conv_general_dilated + eval-mode BN + LeakyReLU)."""
    for p in params:
        y = jax.lax.conv_general_dilated(
            x, p["w"], window_strides=(1,), padding=[(PADDING, PADDING)],
            dimension_numbers=("NCH", "OIH", "NCH"))
        y = y + p["b"][None, :, None]
        scale = p["gamma"] / jnp.sqrt(p["var"] + eps)
        y = (y - p["mean"][None, :, None]) * scale[None, :, None] + p["beta"][None, :, None]
        x = jnp.where(y > 0, y, LEAKY_SLOPE * y)
    return x


if __name__ == "__main__":
    key = jax.random.PRNGKey(0)
    in_channels = 4
    len_seq = 16
    batch = 2
    out_channels = [32, 64, 128]

    x = jax.random.normal(jax.random.fold_in(key, 100),
                          (batch, in_channels, len_seq), jnp.float32)
    params = init_params(key, in_channels, out_channels)

    # Fold + pack ONCE, outside the jitted forward (no per-call fold ops in the hot path).
    w_packed, b_row, b_col = pack_params(params)

    fwd = jax.jit(cnn1d_forward, static_argnames=("c_out_last",))
    out = jax.block_until_ready(fwd(x, w_packed, b_row, b_col, c_out_last=out_channels[-1]))

    ref = cnn1d_reference(x, params)
    assert out.shape == (batch, out_channels[-1], len_seq), out.shape
    assert jnp.allclose(out, ref, atol=1e-4, rtol=1e-4), float(jnp.max(jnp.abs(out - ref)))

    print("KERNEL_OK")
</pallas_src>

<mosaic_0001>
module attributes {stable_mosaic.version = 11 : i64} {
  func.func @_fused_cnn1d_kernel(%arg0: memref<2x16x4xf32, #tpu.memory_space<vmem>>, %arg1: memref<3x128x384xf32, #tpu.memory_space<vmem>>, %arg2: memref<2x128xf32, #tpu.memory_space<vmem>>, %arg3: memref<128x1xf32, #tpu.memory_space<vmem>>, %arg4: memref<2x128x16xf32, #tpu.memory_space<vmem>>, %arg5: memref<2x18x128xf32, #tpu.memory_space<vmem>>) attributes {dimension_semantics = [], scalar_prefetch = 0 : i64, scratch_operands = 1 : i64, tpu.core_type = #tpu.core_type<tc>} {
    %cst = arith.constant 0.000000e+00 : f32
    %0 = vector.broadcast %cst : f32 to vector<2x18x128xf32>
    %c0 = arith.constant 0 : index
    %c0_0 = arith.constant 0 : index
    %c0_1 = arith.constant 0 : index
    %1 = vector.load %arg5[%c0, %c0_0, %c0_1] : memref<2x18x128xf32, #tpu.memory_space<vmem>>, vector<2x18x128xf32>
    tpu.vector_store %arg5[%c0, %c0_0, %c0_1], %0 {strides = array<i32>} : memref<2x18x128xf32, #tpu.memory_space<vmem>>, vector<2x18x128xf32>,
    %c0_2 = arith.constant 0 : index
    %c0_3 = arith.constant 0 : index
    %c0_4 = arith.constant 0 : index
    %2 = vector.load %arg0[%c0_2, %c0_3, %c0_4] : memref<2x16x4xf32, #tpu.memory_space<vmem>>, vector<2x16x4xf32>
    %c0_5 = arith.constant 0 : index
    %c1 = arith.constant 1 : index
    %c0_6 = arith.constant 0 : index
    %3 = vector.load %arg5[%c0_5, %c1, %c0_6] : memref<2x18x128xf32, #tpu.memory_space<vmem>>, vector<2x16x4xf32>
    tpu.vector_store %arg5[%c0_5, %c1, %c0_6], %2 {strides = array<i32>} : memref<2x18x128xf32, #tpu.memory_space<vmem>>, vector<2x16x4xf32>,
    %c0_7 = arith.constant 0 : index
    %c1_8 = arith.constant 1 : index
    %c0_9 = arith.constant 0 : index
    %4 = vector.load %arg5[%c0_7, %c1_8, %c0_9] : memref<2x18x128xf32, #tpu.memory_space<vmem>>, vector<2x16x128xf32>
    %c0_10 = arith.constant 0 : index
    %c0_11 = arith.constant 0 : index
    %c0_12 = arith.constant 0 : index
    %5 = vector.load %arg5[%c0_10, %c0_11, %c0_12] : memref<2x18x128xf32, #tpu.memory_space<vmem>>, vector<2x16x128xf32>
    %c0_13 = arith.constant 0 : index
    %c2 = arith.constant 2 : index
    %c0_14 = arith.constant 0 : index
    %6 = vector.load %arg5[%c0_13, %c2, %c0_14] : memref<2x18x128xf32, #tpu.memory_space<vmem>>, vector<2x16x128xf32>
    %7 = tpu.concatenate %5, %4, %6 in 2 : vector<2x16x128xf32>, vector<2x16x128xf32>, vector<2x16x128xf32> -> vector<2x16x384xf32>
    %8 = vector.shape_cast %7 : vector<2x16x384xf32> to vector<32x384xf32>
    %c0_15 = arith.constant 0 : index
    %c0_16 = arith.constant 0 : index
    %c0_17 = arith.constant 0 : index
    %9 = vector.load %arg1[%c0_15, %c0_16, %c0_17] : memref<3x128x384xf32, #tpu.memory_space<vmem>>, vector<1x128x384xf32>
    %10 = vector.shape_cast %9 : vector<1x128x384xf32> to vector<128x384xf32>
    %cst_18 = arith.constant dense<0.000000e+00> : vector<32x128xf32>
    %11 = tpu.matmul %8, %10, %cst_18 {dimension_numbers = #tpu.dot_dimension_numbers<[1], [1], [0], [0], [0, 0, 1, 0], [], []>} : vector<32x384xf32>, vector<128x384xf32>, vector<32x128xf32> -> vector<32x128xf32>
    %c0_19 = arith.constant 0 : index
    %c0_20 = arith.constant 0 : index
    %12 = vector.load %arg2[%c0_19, %c0_20] : memref<2x128xf32, #tpu.memory_space<vmem>>, vector<1x128xf32>
    %13 = vector.broadcast %12 : vector<1x128xf32> to vector<32x128xf32>
    %14 = arith.addf %11, %13 : vector<32x128xf32>
    %cst_21 = arith.constant 0.000000e+00 : f32
    %15 = vector.broadcast %cst_21 : f32 to vector<32x128xf32>
    %16 = arith.cmpf ogt, %14, %15 : vector<32x128xf32>
    %cst_22 = arith.constant 0.00999999977 : f32
    %17 = vector.broadcast %cst_22 : f32 to vector<32x128xf32>
    %18 = arith.mulf %17, %14 : vector<32x128xf32>
    %19 = arith.select %16, %14, %18 : vector<32x128xi1>, vector<32x128xf32>
    %20 = vector.shape_cast %19 : vector<32x128xf32> to vector<2x16x128xf32>
    %c0_23 = arith.constant 0 : index
    %c1_24 = arith.constant 1 : index
    %c0_25 = arith.constant 0 : index
    %21 = vector.load %arg5[%c0_23, %c1_24, %c0_25] : memref<2x18x128xf32, #tpu.memory_space<vmem>>, vector<2x16x128xf32>
    tpu.vector_store %arg5[%c0_23, %c1_24, %c0_25], %20 {strides = array<i32>} : memref<2x18x128xf32, #tpu.memory_space<vmem>>, vector<2x16x128xf32>,
    %c0_26 = arith.constant 0 : index
    %c0_27 = arith.constant 0 : index
    %c0_28 = arith.constant 0 : index
    %22 = vector.load %arg5[%c0_26, %c0_27, %c0_28] : memref<2x18x128xf32, #tpu.memory_space<vmem>>, vector<2x16x128xf32>
    %c0_29 = arith.constant 0 : index
    %c2_30 = arith.constant 2 : index
    %c0_31 = arith.constant 0 : index
    %23 = vector.load %arg5[%c0_29, %c2_30, %c0_31] : memref<2x18x128xf32, #tpu.memory_space<vmem>>, vector<2x16x128xf32>
    %24 = tpu.concatenate %22, %20, %23 in 2 : vector<2x16x128xf32>, vector<2x16x128xf32>, vector<2x16x128xf32> -> vector<2x16x384xf32>
    %25 = vector.shape_cast %24 : vector<2x16x384xf32> to vector<32x384xf32>
    %c1_32 = arith.constant 1 : index
    %c0_33 = arith.constant 0 : index
    %c0_34 = arith.constant 0 : index
    %26 = vector.load %arg1[%c1_32, %c0_33, %c0_34] : memref<3x128x384xf32, #tpu.memory_space<vmem>>, vector<1x128x384xf32>
    %27 = vector.shape_cast %26 : vector<1x128x384xf32> to vector<128x384xf32>
    %cst_35 = arith.constant dense<0.000000e+00> : vector<32x128xf32>
    %28 = tpu.matmul %25, %27, %cst_35 {dimension_numbers = #tpu.dot_dimension_numbers<[1], [1], [0], [0], [0, 0, 1, 0], [], []>} : vector<32x384xf32>, vector<128x384xf32>, vector<32x128xf32> -> vector<32x128xf32>
    %c1_36 = arith.constant 1 : index
    %c0_37 = arith.constant 0 : index
    %29 = vector.load %arg2[%c1_36, %c0_37] : memref<2x128xf32, #tpu.memory_space<vmem>>, vector<1x128xf32>
    %30 = vector.broadcast %29 : vector<1x128xf32> to vector<32x128xf32>
    %31 = arith.addf %28, %30 : vector<32x128xf32>
    %cst_38 = arith.constant 0.000000e+00 : f32
    %32 = vector.broadcast %cst_38 : f32 to vector<32x128xf32>
    %33 = arith.cmpf ogt, %31, %32 : vector<32x128xf32>
    %cst_39 = arith.constant 0.00999999977 : f32
    %34 = vector.broadcast %cst_39 : f32 to vector<32x128xf32>
    %35 = arith.mulf %34, %31 : vector<32x128xf32>
    %36 = arith.select %33, %31, %35 : vector<32x128xi1>, vector<32x128xf32>
    %37 = vector.shape_cast %36 : vector<32x128xf32> to vector<2x16x128xf32>
    %c0_40 = arith.constant 0 : index
    %c1_41 = arith.constant 1 : index
    %c0_42 = arith.constant 0 : index
    %38 = vector.load %arg5[%c0_40, %c1_41, %c0_42] : memref<2x18x128xf32, #tpu.memory_space<vmem>>, vector<2x16x128xf32>
    tpu.vector_store %arg5[%c0_40, %c1_41, %c0_42], %37 {strides = array<i32>} : memref<2x18x128xf32, #tpu.memory_space<vmem>>, vector<2x16x128xf32>,
    %c0_43 = arith.constant 0 : index
    %c0_44 = arith.constant 0 : index
    %c0_45 = arith.constant 0 : index
    %39 = vector.load %arg5[%c0_43, %c0_44, %c0_45] : memref<2x18x128xf32, #tpu.memory_space<vmem>>, vector<2x16x128xf32>
    %c0_46 = arith.constant 0 : index
    %c2_47 = arith.constant 2 : index
    %c0_48 = arith.constant 0 : index
    %40 = vector.load %arg5[%c0_46, %c2_47, %c0_48] : memref<2x18x128xf32, #tpu.memory_space<vmem>>, vector<2x16x128xf32>
    %41 = tpu.concatenate %39, %37, %40 in 2 : vector<2x16x128xf32>, vector<2x16x128xf32>, vector<2x16x128xf32> -> vector<2x16x384xf32>
    %c2_49 = arith.constant 2 : index
    %c0_50 = arith.constant 0 : index
    %c0_51 = arith.constant 0 : index
    %42 = vector.load %arg1[%c2_49, %c0_50, %c0_51] : memref<3x128x384xf32, #tpu.memory_space<vmem>>, vector<1x128x384xf32>
    %43 = vector.shape_cast %42 : vector<1x128x384xf32> to vector<128x384xf32>
    %44 = vector.extract_strided_slice %41 {offsets = [0, 0, 0], sizes = [1, 16, 384], strides = [1, 1, 1]} : vector<2x16x384xf32> to vector<1x16x384xf32>
    %45 = vector.shape_cast %44 : vector<1x16x384xf32> to vector<16x384xf32>
    %cst_52 = arith.constant dense<0.000000e+00> : vector<128x16xf32>
    %46 = tpu.matmul %43, %45, %cst_52 {dimension_numbers = #tpu.dot_dimension_numbers<[1], [1], [0], [0], [0, 0, 1, 0], [], []>} : vector<128x384xf32>, vector<16x384xf32>, vector<128x16xf32> -> vector<128x16xf32>
    %c0_53 = arith.constant 0 : index
    %c0_54 = arith.constant 0 : index
    %47 = vector.load %arg3[%c0_53, %c0_54] : memref<128x1xf32, #tpu.memory_space<vmem>>, vector<128x1xf32>
    %48 = vector.broadcast %47 : vector<128x1xf32> to vector<128x16xf32>
    %49 = arith.addf %46, %48 : vector<128x16xf32>
    %cst_55 = arith.constant 0.000000e+00 : f32
    %50 = vector.broadcast %cst_55 : f32 to vector<128x16xf32>
    %51 = arith.cmpf ogt, %49, %50 : vector<128x16xf32>
    %cst_56 = arith.constant 0.00999999977 : f32
    %52 = vector.broadcast %cst_56 : f32 to vector<128x16xf32>
    %53 = arith.mulf %52, %49 : vector<128x16xf32>
    %54 = arith.select %51, %49, %53 : vector<128x16xi1>, vector<128x16xf32>
    %c0_57 = arith.constant 0 : index
    %c0_58 = arith.constant 0 : index
    %c0_59 = arith.constant 0 : index
    %55 = vector.load %arg4[%c0_57, %c0_58, %c0_59] : memref<2x128x16xf32, #tpu.memory_space<vmem>>, vector<1x128x16xf32>
    %56 = vector.shape_cast %55 : vector<1x128x16xf32> to vector<128x16xf32>
    %57 = vector.shape_cast %54 : vector<128x16xf32> to vector<1x128x16xf32>
    tpu.vector_store %arg4[%c0_57, %c0_58, %c0_59], %57 {strides = array<i32>} : memref<2x128x16xf32, #tpu.memory_space<vmem>>, vector<1x128x16xf32>,
    %58 = vector.extract_strided_slice %41 {offsets = [1, 0, 0], sizes = [1, 16, 384], strides = [1, 1, 1]} : vector<2x16x384xf32> to vector<1x16x384xf32>
    %59 = vector.shape_cast %58 : vector<1x16x384xf32> to vector<16x384xf32>
    %cst_60 = arith.constant dense<0.000000e+00> : vector<128x16xf32>
    %60 = tpu.matmul %43, %59, %cst_60 {dimension_numbers = #tpu.dot_dimension_numbers<[1], [1], [0], [0], [0, 0, 1, 0], [], []>} : vector<128x384xf32>, vector<16x384xf32>, vector<128x16xf32> -> vector<128x16xf32>
    %c0_61 = arith.constant 0 : index
    %c0_62 = arith.constant 0 : index
    %61 = vector.load %arg3[%c0_61, %c0_62] : memref<128x1xf32, #tpu.memory_space<vmem>>, vector<128x1xf32>
    %62 = vector.broadcast %61 : vector<128x1xf32> to vector<128x16xf32>
    %63 = arith.addf %60, %62 : vector<128x16xf32>
    %cst_63 = arith.constant 0.000000e+00 : f32
    %64 = vector.broadcast %cst_63 : f32 to vector<128x16xf32>
    %65 = arith.cmpf ogt, %63, %64 : vector<128x16xf32>
    %cst_64 = arith.constant 0.00999999977 : f32
    %66 = vector.broadcast %cst_64 : f32 to vector<128x16xf32>
    %67 = arith.mulf %66, %63 : vector<128x16xf32>
    %68 = arith.select %65, %63, %67 : vector<128x16xi1>, vector<128x16xf32>
    %c1_65 = arith.constant 1 : index
    %c0_66 = arith.constant 0 : index
    %c0_67 = arith.constant 0 : index
    %69 = vector.load %arg4[%c1_65, %c0_66, %c0_67] : memref<2x128x16xf32, #tpu.memory_space<vmem>>, vector<1x128x16xf32>
    %70 = vector.shape_cast %69 : vector<1x128x16xf32> to vector<128x16xf32>
    %71 = vector.shape_cast %68 : vector<128x16xf32> to vector<1x128x16xf32>
    tpu.vector_store %arg4[%c1_65, %c0_66, %c0_67], %71 {strides = array<i32>} : memref<2x128x16xf32, #tpu.memory_space<vmem>>, vector<1x128x16xf32>,
    return
  }
}

</mosaic_0001>

<bundles_post_ra>
// kernel: cnn1d_forward.1
= control target key start
LH: loop header
LB: loop body
LE: loop exit
PB: predicated region body
PF: predicated region fallthrough
CT: control target
= control target key end

     0   :  { %9 = vsyncpa [#allocation4], 0  ;;  %s1764_s15 = smov [#allocation3]   ;;  %s2116_s0 = inlined_call_operand.vmem [shape: f32[2,16,4], index: 0, kind: input, shape index: {}]   ;;  %s2117_s1 = inlined_call_operand.hbm [shape: f32[3,128,384], index: 1, kind: input, shape index: {}]   ;;  %s2118_s2 = inlined_call_operand.vmem [shape: f32[2,128], index: 2, kind: input, shape index: {}]   ;;  %s2119_s3 = inlined_call_operand.vmem [shape: f32[128,1], index: 3, kind: input, shape index: {}]   ;;  %s2120_s4 = inlined_call_operand.vmem [shape: f32[2,128,16], index: 4, kind: output, shape index: {}]  }
   0x1   :  { %s17_s16 = sshll.u32 %s1764_s15, 4  ;;  %s18_s16 = int_to_ptr.vmem [resolvable:$true] %s17_s16 }
   0x2   :  { %s1750_s17 = scalar_lea.vmem %s18_s16, 18432  ;;  %p1755_p1 = scmp.lt.s32.totalorder %s18_s16, %s18_s16 }
   0x3   :  { %p1751_p0 = scmp.ne.s32.totalorder %s18_s16, %s1750_s17  ;;  %p1756_p2 = scmp.lt.s32.totalorder %s1750_s17, %s1750_s17 }
   0x5   :  { %p1757_p3 = por %p1756_p2, %p1755_p1 }
   0x7   :  { %p1758_p4 = pnand %p1757_p3, %p1751_p0 }
   0x9   :  { %1761 = shalt.err (!%p1758_p4)
}
   0xa   :  { %s1765_s18 = smov 384   ;;  %s1766_s19 = smov 24  }
   0xb   :  { %23 = dma.hbm_to_vmem [thread:$0]  %s2117_s1, 18432, %s18_s16, [#allocation4], %s1765_s18, %s1765_s18, %s1766_s19  }
   0xc   :  { %1762 = dma.done.wait [#allocation4], 18432  }
   0xd   :  { %1763 = vsyncadd [#allocation4], 4294948864  ;;  %v1767_v0 = vmov 0.0   ;;  %v104_v1 = vld [vmem:[#allocation3 + $0x170] sm:$0xff]  ;;  %v105_v2 = vld [vmem:[#allocation3 + $0x178] sm:$0xff]  ;;  %vm41_vm0 = vcmask 31744  }
   0xe   :  { %31 = vst [vmem:[#allocation2] sm:$0xff] %v1767_v0  ;;  %32 = vst [vmem:[#allocation2 + $0x8] sm:$0xff] %v1767_v0  ;;  %v103_v3 = vld [vmem:[#allocation3 + $0x168] sm:$0xff]  ;;  %111 = vmatprep.subr.mxu0 %v104_v1  ;;  %1603 = vmatprep.subr.mxu1 %v105_v2  ;;  %v101_v4 = vld [vmem:[#allocation3 + $0x158] sm:$0xff]  ;;  %vm1036_vm10 = vcmask 130048  }
   0xf   :  { %33 = vst [vmem:[#allocation2 + $0x10] sm:$0x3] %v1767_v0  ;;  %34 = vst [vmem:[#allocation2 + $0x18] sm:$0xff] %v1767_v0  ;;  %v102_v5 = vld [vmem:[#allocation3 + $0x160] sm:$0xff]  ;;  %112 = vmatpush1.xpose.msra.mxu0 %v103_v3  ;;  %1604 = vmatpush3.xpose.msra.mxu1 %v105_v2  ;;  %v100_v6 = vld [vmem:[#allocation3 + $0x150] sm:$0xff] }
  0x10   :  { %35 = vst [vmem:[#allocation2 + $0x20] sm:$0xff] %v1767_v0  ;;  %36 = vst [vmem:[#allocation2 + $0x28] sm:$0x3] %v1767_v0  ;;  %113 = vmatprep.subr.mxu0 %v101_v4  ;;  %1605 = vmatprep.subr.mxu1 %v102_v5  ;;  %v98_v7 = vld [vmem:[#allocation3 + $0x140] sm:$0xff]  ;;  %v99_v8 = vld [vmem:[#allocation3 + $0x148] sm:$0xff] }
  0x11   :  { %v97_v9 = vld [vmem:[#allocation3 + $0x138] sm:$0xff]  ;;  %v95_v10 = vld [vmem:[#allocation3 + $0x128] sm:$0xff]  ;;  %v96_v11 = vld [vmem:[#allocation3 + $0x130] sm:$0xff] }
  0x12   :  { %v94_v12 = vld [vmem:[#allocation3 + $0x120] sm:$0xff]  ;;  %v92_v13 = vld [vmem:[#allocation3 + $0x110] sm:$0xff]  ;;  %v93_v14 = vld [vmem:[#allocation3 + $0x118] sm:$0xff] }
  0x13   :  { %114 = vmatpush1.xpose.msra.mxu0 %v100_v6  ;;  %1606 = vmatpush3.xpose.msra.mxu1 %v102_v5  ;;  %v91_v15 = vld [vmem:[#allocation3 + $0x108] sm:$0xff]  ;;  %v89_v16 = vld [vmem:[#allocation3 + $0xf8] sm:$0xff]  ;;  %v90_v17 = vld [vmem:[#allocation3 + $0x100] sm:$0xff] }
  0x14   :  { %115 = vmatprep.subr.mxu0 %v98_v7  ;;  %1607 = vmatprep.subr.mxu1 %v99_v8  ;;  %v37_v18 = vld [vmem:[%s2116_s0] sm:$0xff]  ;;  %v38_v19 = vld [vmem:[%s2116_s0 + $0x8] sm:$0xff]  ;;  %v39_v20 = vld [vmem:[%s2116_s0 + $0x10] sm:$0xff] }
  0x15   :  { %42 = vst.msk [vmem:[#allocation2 + $0x1] sm:$0xff] %vm41_vm0, %v37_v18  ;;  %43 = vst.msk [vmem:[#allocation2 + $0x9] sm:$0xff] %vm41_vm0, %v38_v19  ;;  %v40_v21 = vld [vmem:[%s2116_s0 + $0x18] sm:$0xff]  ;;  %v88_v22 = vld [vmem:[#allocation3 + $0xf0] sm:$0xff] }
  0x16   :  { %44 = vst.msk [vmem:[#allocation2 + $0x19] sm:$0xff] %vm41_vm0, %v39_v20  ;;  %45 = vst.msk [vmem:[#allocation2 + $0x21] sm:$0xff] %vm41_vm0, %v40_v21  ;;  %v86_v23 = vld [vmem:[#allocation3 + $0xe0] sm:$0xff]  ;;  %v87_v24 = vld [vmem:[#allocation3 + $0xe8] sm:$0xff] }
  0x17   :  { %116 = vmatpush1.xpose.msra.mxu0 %v97_v9  ;;  %1608 = vmatpush3.xpose.msra.mxu1 %v99_v8  ;;  %v85_v25 = vld [vmem:[#allocation3 + $0xd8] sm:$0xff]  ;;  %v83_v26 = vld [vmem:[#allocation3 + $0xc8] sm:$0xff]  ;;  %v84_v27 = vld [vmem:[#allocation3 + $0xd0] sm:$0xff] }
  0x18   :  { %117 = vmatprep.subr.mxu0 %v95_v10  ;;  %1609 = vmatprep.subr.mxu1 %v96_v11  ;;  %v82_v30 = vld [vmem:[#allocation3 + $0xc0] sm:$0xff]  ;;  %v80_v31 = vld [vmem:[#allocation3 + $0xb0] sm:$0xff]  ;;  %v81_v32 = vld [vmem:[#allocation3 + $0xb8] sm:$0xff] }
  0x19   :  { %v79_v33 = vld [vmem:[#allocation3 + $0xa8] sm:$0xff]  ;;  %v77_v34 = vld [vmem:[#allocation3 + $0x98] sm:$0xff]  ;;  %v78_v35 = vld [vmem:[#allocation3 + $0xa0] sm:$0xff] }
  0x1a   :  { %v76_v36 = vld [vmem:[#allocation3 + $0x90] sm:$0xff]  ;;  %v74_v37 = vld [vmem:[#allocation3 + $0x80] sm:$0xff]  ;;  %v75_v38 = vld [vmem:[#allocation3 + $0x88] sm:$0xff] }
  0x1b   :  { %118 = vmatpush1.xpose.msra.mxu0 %v94_v12  ;;  %1610 = vmatpush3.xpose.msra.mxu1 %v96_v11  ;;  %v73_v39 = vld [vmem:[#allocation3 + $0x78] sm:$0xff]  ;;  %v71_v40 = vld [vmem:[#allocation3 + $0x68] sm:$0xff]  ;;  %v72_v41 = vld [vmem:[#allocation3 + $0x70] sm:$0xff] }
  0x1c   :  { %119 = vmatprep.subr.mxu0 %v92_v13  ;;  %1611 = vmatprep.subr.mxu1 %v93_v14  ;;  %v46_v28 = vld [vmem:[#allocation2 + $0x1] sm:$0xff]  ;;  %v70_v42 = vld [vmem:[#allocation3 + $0x60] sm:$0xff]  ;;  %v67_v45 = vld [vmem:[#allocation3 + $0x48] sm:$0xff] }
  0x1d   :  { %v54_v29 = vld [vmem:[#allocation2 + $0x2] sm:$0xff]  ;;  %175 = vmatprep.mubr.f32.mxu0 %v46_v28  ;;  %v66_v47 = vld [vmem:[#allocation3 + $0x40] sm:$0xff]  ;;  %v63_v50 = vld [vmem:[#allocation3 + $0x28] sm:$0xff] }
  0x1e   :  { %1635 = vmatprep.mubr.f32.mxu1 %v54_v29  ;;  %v68_v43 = vld [vmem:[#allocation3 + $0x50] sm:$0xff]  ;;  %v69_v44 = vld [vmem:[#allocation3 + $0x58] sm:$0xff]  ;;  %v62_v49 = vld [vmem:[#allocation3 + $0x20] sm:$0xff] }
  0x1f   :  { %120 = vmatpush1.xpose.msra.mxu0 %v91_v15  ;;  %1612 = vmatpush3.xpose.msra.mxu1 %v93_v14  ;;  %v65_v46 = vld [vmem:[#allocation3 + $0x38] sm:$0xff]  ;;  %v64_v48 = vld [vmem:[#allocation3 + $0x30] sm:$0xff]  ;;  %v59_v52 = vld [vmem:[#allocation3 + $0x8] sm:$0xff] }
  0x20   :  { %121 = vmatprep.subr.mxu0 %v89_v16  ;;  %1613 = vmatprep.subr.mxu1 %v90_v17  ;;  %v61_v51 = vld [vmem:[#allocation3 + $0x18] sm:$0xff]  ;;  %v60_v53 = vld [vmem:[#allocation3 + $0x10] sm:$0xff]  ;;  %v58_v54 = vld [vmem:[#allocation3] sm:$0xff] }
  0x21   :  { %v352_v55 = vld [vmem:[#allocation3 + $0x2f0] sm:$0xff]  ;;  %v353_v56 = vld [vmem:[#allocation3 + $0x2f8] sm:$0xff]  ;;  %v351_v61 = vld [vmem:[#allocation3 + $0x2e8] sm:$0xff] }
  0x22   :  { %v50_v57 = vld [vmem:[#allocation2] sm:$0xff]  ;;  %v55_v58 = vld [vmem:[#allocation2 + $0xa] sm:$0xff]  ;;  %v347_v5 = vld [vmem:[#allocation3 + $0x2c8] sm:$0xff] }
  0x23   :  { %122 = vmatpush1.xpose.msra.mxu0 %v88_v22  ;;  %1614 = vmatpush3.xpose.msra.mxu1 %v90_v17  ;;  %v47_v59 = vld [vmem:[#allocation2 + $0x9] sm:$0xff]  ;;  %v56_v60 = vld [vmem:[#allocation2 + $0x1a] sm:$0xff] }
  0x24   :  { %123 = vmatprep.subr.mxu0 %v86_v23  ;;  %1615 = vmatprep.subr.mxu1 %v87_v24  ;;  %v349_v62 = vld [vmem:[#allocation3 + $0x2d8] sm:$0xff]  ;;  %v350_v63 = vld [vmem:[#allocation3 + $0x2e0] sm:$0xff]  ;;  %v48_v2 = vld [vmem:[#allocation2 + $0x19] sm:$0xff] }
  0x25   :  { %v51_v0 = vld [vmem:[#allocation2 + $0x8] sm:$0xff]  ;;  %v348_v3 = vld [vmem:[#allocation3 + $0x2d0] sm:$0xff]  ;;  %v346_v4 = vld [vmem:[#allocation3 + $0x2c0] sm:$0xff] }
  0x26   :  { %v57_v1 = vld [vmem:[#allocation2 + $0x22] sm:$0xff]  ;;  %v52_v6 = vld [vmem:[#allocation2 + $0x18] sm:$0xff]  ;;  %v342_v12 = vld [vmem:[#allocation3 + $0x2a0] sm:$0xff] }
  0x27   :  { %124 = vmatpush1.xpose.msra.mxu0 %v85_v25  ;;  %1616 = vmatpush3.xpose.msra.mxu1 %v87_v24  ;;  %v49_v7 = vld [vmem:[#allocation2 + $0x21] sm:$0xff]  ;;  %v343_v9 = vld [vmem:[#allocation3 + $0x2a8] sm:$0xff]  ;;  %v338_v17 = vld [vmem:[#allocation3 + $0x280] sm:$0xff] }
  0x28   :  { %125 = vmatprep.subr.mxu0 %v83_v26  ;;  %1617 = vmatprep.subr.mxu1 %v84_v27  ;;  %v345_v8 = vld [vmem:[#allocation3 + $0x2b8] sm:$0xff]  ;;  %v344_v10 = vld [vmem:[#allocation3 + $0x2b0] sm:$0xff]  ;;  %v339_v15 = vld [vmem:[#allocation3 + $0x288] sm:$0xff] }
  0x29   :  { %v53_v11 = vld [vmem:[#allocation2 + $0x20] sm:$0xff]  ;;  %v341_v14 = vld [vmem:[#allocation3 + $0x298] sm:$0xff]  ;;  %v334_v19 = vld [vmem:[#allocation3 + $0x260] sm:$0xff] }
  0x2a   :  { %v340_v13 = vld [vmem:[#allocation3 + $0x290] sm:$0xff]  ;;  %v337_v16 = vld [vmem:[#allocation3 + $0x278] sm:$0xff]  ;;  %v335_v20 = vld [vmem:[#allocation3 + $0x268] sm:$0xff] }
  0x2b   :  { %126 = vmatpush1.xpose.msra.mxu0 %v82_v30  ;;  %1618 = vmatpush3.xpose.msra.mxu1 %v84_v27  ;;  %v336_v18 = vld [vmem:[#allocation3 + $0x270] sm:$0xff]  ;;  %v333_v21 = vld [vmem:[#allocation3 + $0x258] sm:$0xff]  ;;  %v331_v22 = vld [vmem:[#allocation3 + $0x248] sm:$0xff] }
  0x2c   :  { %127 = vmatprep.subr.mxu0 %v80_v31  ;;  %1619 = vmatprep.subr.mxu1 %v81_v32  ;;  %v332_v23 = vld [vmem:[#allocation3 + $0x250] sm:$0xff]  ;;  %v330_v24 = vld [vmem:[#allocation3 + $0x240] sm:$0xff]  ;;  %v329_v26 = vld [vmem:[#allocation3 + $0x238] sm:$0xff] }
  0x2d   :  { %v328_v25 = vld [vmem:[#allocation3 + $0x230] sm:$0xff]  ;;  %v327_v27 = vld [vmem:[#allocation3 + $0x228] sm:$0xff]  ;;  %v325_v28 = vld [vmem:[#allocation3 + $0x218] sm:$0xff] }
  0x2e   :  { %v326_v29 = vld [vmem:[#allocation3 + $0x220] sm:$0xff]  ;;  %v324_v30 = vld [vmem:[#allocation3 + $0x210] sm:$0xff] }
  0x2f   :  { %128 = vmatpush1.xpose.msra.mxu0 %v79_v33  ;;  %1620 = vmatpush3.xpose.msra.mxu1 %v81_v32  ;;  %v322_v31 = vld [vmem:[#allocation3 + $0x200] sm:$0xff]  ;;  %v323_v32 = vld [vmem:[#allocation3 + $0x208] sm:$0xff]  ;;  %v321_v33 = vld [vmem:[#allocation3 + $0x1f8] sm:$0xff] }
  0x30   :  { %129 = vmatprep.subr.mxu0 %v77_v34  ;;  %1621 = vmatprep.subr.mxu1 %v78_v35  ;;  %v319_v34 = vld [vmem:[#allocation3 + $0x1e8] sm:$0xff] }
  0x33   :  { %130 = vmatpush1.xpose.msra.mxu0 %v76_v36  ;;  %1622 = vmatpush3.xpose.msra.mxu1 %v78_v35  ;;  %v318_v35 = vld [vmem:[#allocation3 + $0x1e0] sm:$0xff]  ;;  %v316_v36 = vld [vmem:[#allocation3 + $0x1d0] sm:$0xff] }
  0x34   :  { %131 = vmatprep.subr.mxu0 %v74_v37  ;;  %1623 = vmatprep.subr.mxu1 %v75_v38  ;;  %v315_v37 = vld [vmem:[#allocation3 + $0x1c8] sm:$0xff] }
  0x37   :  { %132 = vmatpush1.xpose.msra.mxu0 %v73_v39  ;;  %1624 = vmatpush3.xpose.msra.mxu1 %v75_v38  ;;  %v320_v38 = vld [vmem:[#allocation3 + $0x1f0] sm:$0xff]  ;;  %v313_v39 = vld [vmem:[#allocation3 + $0x1b8] sm:$0xff] }
  0x38   :  { %133 = vmatprep.subr.mxu0 %v71_v40  ;;  %1625 = vmatprep.subr.mxu1 %v72_v41  ;;  %v312_v40 = vld [vmem:[#allocation3 + $0x1b0] sm:$0xff] }
  0x3b   :  { %134 = vmatpush1.xpose.msra.mxu0 %v70_v42  ;;  %1626 = vmatpush3.xpose.msra.mxu1 %v72_v41  ;;  %v317_v41 = vld [vmem:[#allocation3 + $0x1d8] sm:$0xff]  ;;  %v310_v42 = vld [vmem:[#allocation3 + $0x1a0] sm:$0xff] }
  0x3c   :  { %135 = vmatprep.subr.mxu0 %v68_v43  ;;  %1627 = vmatprep.subr.mxu1 %v69_v44  ;;  %v309_v43 = vld [vmem:[#allocation3 + $0x198] sm:$0xff] }
  0x3f   :  { %136 = vmatpush1.xpose.msra.mxu0 %v67_v45  ;;  %1628 = vmatpush3.xpose.msra.mxu1 %v69_v44  ;;  %v314_v44 = vld [vmem:[#allocation3 + $0x1c0] sm:$0xff]  ;;  %v307_v45 = vld [vmem:[#allocation3 + $0x188] sm:$0xff] }
  0x40   :  { %137 = vmatprep.subr.mxu0 %v65_v46  ;;  %1629 = vmatprep.subr.mxu1 %v66_v47  ;;  %v306_v46 = vld [vmem:[#allocation3 + $0x180] sm:$0xff] }
  0x43   :  { %138 = vmatpush1.xpose.msra.mxu0 %v64_v48  ;;  %1630 = vmatpush3.xpose.msra.mxu1 %v66_v47  ;;  %v311_v47 = vld [vmem:[#allocation3 + $0x1a8] sm:$0xff]  ;;  %v308_v48 = vld [vmem:[#allocation3 + $0x190] sm:$0xff] }
  0x44   :  { %139 = vmatprep.subr.mxu0 %v62_v49  ;;  %1631 = vmatprep.subr.mxu1 %v63_v50  ;;  %v1509_v49 = vld [vmem:[%s2118_s2] ss:$0 sm:$0xff] }
  0x47   :  { %140 = vmatpush1.xpose.msra.mxu0 %v61_v51  ;;  %1632 = vmatpush3.xpose.msra.mxu1 %v63_v50 }
  0x48   :  { %141 = vmatprep.subr.mxu0 %v59_v52  ;;  %1633 = vmatprep.subr.mxu1 %v60_v53 }
  0x4b   :  { %142 = vmatpush1.xpose.msra.mxu0 %v58_v54  ;;  %1634 = vmatpush3.xpose.msra.mxu1 %v60_v53 }
  0x4c   :  { %359 = vmatprep.subr.mxu0 %v352_v55  ;;  %1641 = vmatprep.subr.mxu1 %v353_v56 }
  0x4e   :  { %176 = vmatmul.mubr.f32.vlgmr.msra.gmra.mxu0 %v50_v57  ;;  %1636 = vmatmul.mubr.f32.vlgmr.msra.gmra.mxu1 %v55_v58 }
  0x4f   :  { %180 = vmatprep.mubr.f32.mxu0 %v47_v59  ;;  %1638 = vmatprep.mubr.f32.mxu1 %v56_v60 }
  0x50   :  { %360 = vmatpush1.xpose.msra.mxu0 %v351_v61  ;;  %1642 = vmatpush3.xpose.msra.mxu1 %v353_v56 }
  0x51   :  { %361 = vmatprep.subr.mxu0 %v349_v62  ;;  %1643 = vmatprep.subr.mxu1 %v350_v63 }
  0x52   :  { %181 = vmatmul.mubr.f32.gmra.mxu0 %v51_v0  ;;  %1639 = vmatmul.mubr.f32.gmra.mxu1 %v57_v1 }
  0x53   :  { %185 = vmatprep.mubr.f32.mxu0 %v48_v2 }
  0x54   :  { %362 = vmatpush1.xpose.msra.mxu0 %v348_v3  ;;  %1644 = vmatpush3.xpose.msra.mxu1 %v350_v63 }
  0x55   :  { %363 = vmatprep.subr.mxu0 %v346_v4  ;;  %1645 = vmatprep.subr.mxu1 %v347_v5 }
  0x56   :  { %186 = vmatmul.mubr.f32.gmra.mxu0 %v52_v6 }
  0x57   :  { %190 = vmatprep.mubr.f32.mxu0 %v49_v7 }
  0x58   :  { %364 = vmatpush1.xpose.msra.mxu0 %v345_v8  ;;  %1646 = vmatpush3.xpose.msra.mxu1 %v347_v5 }
  0x59   :  { %365 = vmatprep.subr.mxu0 %v343_v9  ;;  %1647 = vmatprep.subr.mxu1 %v344_v10 }
  0x5a   :  { %191 = vmatmul.mubr.f32.gmra.mxu0 %v53_v11 }
  0x5c   :  { %366 = vmatpush1.xpose.msra.mxu0 %v342_v12  ;;  %1648 = vmatpush3.xpose.msra.mxu1 %v344_v10 }
  0x5d   :  { %367 = vmatprep.subr.mxu0 %v340_v13  ;;  %1649 = vmatprep.subr.mxu1 %v341_v14 }
  0x60   :  { %368 = vmatpush1.xpose.msra.mxu0 %v339_v15  ;;  %1650 = vmatpush3.xpose.msra.mxu1 %v341_v14 }
  0x61   :  { %369 = vmatprep.subr.mxu0 %v337_v16  ;;  %1651 = vmatprep.subr.mxu1 %v338_v17 }
  0x64   :  { %370 = vmatpush1.xpose.msra.mxu0 %v336_v18  ;;  %1652 = vmatpush3.xpose.msra.mxu1 %v338_v17 }
  0x65   :  { %371 = vmatprep.subr.mxu0 %v334_v19  ;;  %1653 = vmatprep.subr.mxu1 %v335_v20 }
  0x68   :  { %372 = vmatpush1.xpose.msra.mxu0 %v333_v21  ;;  %1654 = vmatpush3.xpose.msra.mxu1 %v335_v20 }
  0x69   :  { %373 = vmatprep.subr.mxu0 %v331_v22  ;;  %1655 = vmatprep.subr.mxu1 %v332_v23  ;;  %v1812_v22 = vld [vmem:[#allocation3 + $0x308] sm:$0xff] }
  0x6c   :  { %374 = vmatpush1.xpose.msra.mxu0 %v330_v24  ;;  %1656 = vmatpush3.xpose.msra.mxu1 %v332_v23  ;;  %v1814_v23 = vld [vmem:[#allocation3 + $0x310] sm:$0xff]  ;;  %v1768_v24 = vmov 0  }
  0x6d   :  { %375 = vmatprep.subr.mxu0 %v328_v25  ;;  %1657 = vmatprep.subr.mxu1 %v329_v26  ;;  %v604_v25 = vld [vmem:[%s2119_s3 + $0x10] sm:$0xff] }
  0x6e   :  { %1741 = vset.pattern.permute.xlu1 %v1768_v24  ;;  %1740 = vset.pattern.permute.xlu0 %v1768_v24  ;;  %v1892_v24 = vld [vmem:[#allocation3 + $0x330] sm:$0xff] }
  0x6f   :  { %630 = vperm.xlu1 %1741, %v604_v25  }
  0x70   :  { %376 = vmatpush1.xpose.msra.mxu0 %v327_v27  ;;  %1658 = vmatpush3.xpose.msra.mxu1 %v329_v26  ;;  %v602_v26 = vld [vmem:[%s2119_s3] sm:$0xff]  ;;  %v605_v27 = vld [vmem:[%s2119_s3 + $0x18] sm:$0xff] }
  0x71   :  { %377 = vmatprep.subr.mxu0 %v325_v28  ;;  %1659 = vmatprep.subr.mxu1 %v326_v29  ;;  %v603_v28 = vld [vmem:[%s2119_s3 + $0x8] sm:$0xff] }
  0x72   :  { %620 = vperm.xlu0 %1740, %v602_v26  }
  0x73   :  { %635 = vperm.xlu1 %1741, %v605_v27  }
  0x74   :  { %378 = vmatpush1.xpose.msra.mxu0 %v324_v30  ;;  %1660 = vmatpush3.xpose.msra.mxu1 %v326_v29  ;;  %v607_v29 = vld [vmem:[%s2119_s3 + $0x28] sm:$0xff]  ;;  %v606_v30 = vld [vmem:[%s2119_s3 + $0x20] sm:$0xff] }
  0x75   :  { %379 = vmatprep.subr.mxu0 %v322_v31  ;;  %1661 = vmatprep.subr.mxu1 %v323_v32  ;;  %v609_v31 = vld [vmem:[%s2119_s3 + $0x38] sm:$0xff] }
  0x76   :  { %625 = vperm.xlu0 %1740, %v603_v28  }
  0x77   :  { %645 = vperm.xlu1 %1741, %v607_v29  }
  0x78   :  { %380 = vmatpush1.xpose.msra.mxu0 %v321_v33  ;;  %1662 = vmatpush3.xpose.msra.mxu1 %v323_v32  ;;  %v608_v32 = vld [vmem:[%s2119_s3 + $0x30] sm:$0xff]  ;;  %v611_v33 = vld [vmem:[%s2119_s3 + $0x48] sm:$0xff] }
  0x79   :  { %381 = vmatprep.subr.mxu0 %v319_v34  ;;  %1663 = vmatprep.subr.mxu1 %v320_v38  ;;  %v610_v34 = vld [vmem:[%s2119_s3 + $0x40] sm:$0xff] }
  0x7a   :  { %640 = vperm.xlu0 %1740, %v606_v30  }
  0x7b   :  { %655 = vperm.xlu1 %1741, %v609_v31  }
  0x7c   :  { %382 = vmatpush1.xpose.msra.mxu0 %v318_v35  ;;  %1664 = vmatpush3.xpose.msra.mxu1 %v320_v38  ;;  %v613_v35 = vld [vmem:[%s2119_s3 + $0x58] sm:$0xff]  ;;  %v614_v38 = vld [vmem:[%s2119_s3 + $0x60] sm:$0xff] }
  0x7d   :  { %383 = vmatprep.subr.mxu0 %v316_v36  ;;  %1665 = vmatprep.subr.mxu1 %v317_v41  ;;  %v612_v36 = vld [vmem:[%s2119_s3 + $0x50] sm:$0xff] }
  0x7e   :  { %650 = vperm.xlu0 %1740, %v608_v32  }
  0x7f   :  { %665 = vperm.xlu1 %1741, %v611_v33  }
  0x80   :  { %384 = vmatpush1.xpose.msra.mxu0 %v315_v37  ;;  %1666 = vmatpush3.xpose.msra.mxu1 %v317_v41  ;;  %v615_v37 = vld [vmem:[%s2119_s3 + $0x68] sm:$0xff] }
  0x81   :  { %385 = vmatprep.subr.mxu0 %v313_v39  ;;  %1667 = vmatprep.subr.mxu1 %v314_v44  ;;  %v617_v39 = vld [vmem:[%s2119_s3 + $0x78] sm:$0xff] }
  0x82   :  { %660 = vperm.xlu0 %1740, %v610_v34  }
  0x83   :  { %675 = vperm.xlu1 %1741, %v613_v35  }
  0x84   :  { %386 = vmatpush1.xpose.msra.mxu0 %v312_v40  ;;  %1668 = vmatpush3.xpose.msra.mxu1 %v314_v44  ;;  %v616_v40 = vld [vmem:[%s2119_s3 + $0x70] sm:$0xff] }
  0x85   :  { %387 = vmatprep.subr.mxu0 %v310_v42  ;;  %1669 = vmatprep.subr.mxu1 %v311_v47 }
  0x86   :  { %670 = vperm.xlu0 %1740, %v612_v36  }
  0x87   :  { %685 = vperm.xlu1 %1741, %v615_v37  }
  0x88   :  { %388 = vmatpush1.xpose.msra.mxu0 %v309_v43  ;;  %1670 = vmatpush3.xpose.msra.mxu1 %v311_v47  ;;  %v1510_v43 = vld [vmem:[%s2118_s2 + $0x1] ss:$0 sm:$0xff] }
  0x89   :  { %389 = vmatprep.subr.mxu0 %v307_v45  ;;  %1671 = vmatprep.subr.mxu1 %v308_v48 }
  0x8a   :  { %680 = vperm.xlu0 %1740, %v614_v38  }
  0x8b   :  { %695 = vperm.xlu1 %1741, %v617_v39  }
  0x8c   :  { %390 = vmatpush1.xpose.msra.mxu0 %v306_v46  ;;  %1672 = vmatpush3.xpose.msra.mxu1 %v308_v48 }
  0x8e   :  { %690 = vperm.xlu0 %1740, %v616_v40  }
  0x8f   :  { %1076 = vperm.xlu1 %1741, %v603_v28   ;;  %v563_v28 = vld [vmem:[#allocation3 + $0x348] sm:$0xff] }
  0x92   :  { %1071 = vperm.xlu0 %1740, %v602_v26   ;;  %v1896_v26 = vld [vmem:[#allocation3 + $0x350] sm:$0xff] }
  0x93   :  { %1086 = vperm.xlu1 %1741, %v605_v27   ;;  %v1899_v27 = vld [vmem:[#allocation3 + $0x3a0] sm:$0xff] }
  0x96   :  { %1081 = vperm.xlu0 %1740, %v604_v25   ;;  %v1894_v25 = vld [vmem:[#allocation3 + $0x388] sm:$0xff] }
  0x97   :  { %1096 = vperm.xlu1 %1741, %v607_v29   ;;  %v1905_v29 = vld [vmem:[#allocation3 + $0x3b8] sm:$0xff] }
  0x9a   :  { %1091 = vperm.xlu0 %1740, %v606_v30   ;;  %v567_v30 = vld [vmem:[#allocation3 + $0x368] sm:$0xff] }
  0x9b   :  { %1106 = vperm.xlu1 %1741, %v609_v31   ;;  %v1907_v31 = vld [vmem:[#allocation3 + $0x3d0] sm:$0xff] }
  0x9e   :  { %1101 = vperm.xlu0 %1740, %v608_v32   ;;  %v566_v32 = vld [vmem:[#allocation3 + $0x360] sm:$0xff] }
  0x9f   :  { %1116 = vperm.xlu1 %1741, %v611_v33   ;;  %v1911_v33 = vld [vmem:[#allocation3 + $0x3e8] sm:$0xff] }
  0xa2   :  { %1111 = vperm.xlu0 %1740, %v610_v34   ;;  %v570_v34 = vld [vmem:[#allocation3 + $0x380] sm:$0xff] }
  0xa3   :  { %1126 = vperm.xlu1 %1741, %v613_v35   ;;  %v1913_v35 = vld [vmem:[#allocation3 + $0x400] sm:$0xff] }
  0xa6   :  { %1121 = vperm.xlu0 %1740, %v612_v36   ;;  %v569_v36 = vld [vmem:[#allocation3 + $0x378] sm:$0xff] }
  0xa7   :  { %1136 = vperm.xlu1 %1741, %v615_v37   ;;  %v1917_v37 = vld [vmem:[#allocation3 + $0x418] sm:$0xff] }
  0xaa   :  { %1131 = vperm.xlu0 %1740, %v614_v38   ;;  %v573_v38 = vld [vmem:[#allocation3 + $0x398] sm:$0xff] }
  0xab   :  { %1146 = vperm.xlu1 %1741, %v617_v39   ;;  %v1919_v39 = vld [vmem:[#allocation3 + $0x430] sm:$0xff] }
  0xae   :  { %1141 = vperm.xlu0 %1740, %v616_v40   ;;  %v572_v40 = vld [vmem:[#allocation3 + $0x390] sm:$0xff] }
 0x10e   :  { %v177_v50 = vpop.f32.mrf.mxu0  ;;  %v1637_v51 = vpop.f32.mrf.mxu1 }
 0x10f   :  { %v178_v52 = vadd.f32 %v1509_v49, %v177_v50 }
 0x110   :  { %v179_v53 = vpop.f32.mrf.mxu0  ;;  %v262_v54 = vpop.f32.mrf.mxu1 }
 0x111   :  { %v263_v55 = vadd.f32 %v262_v54, %v178_v52 }
 0x112   :  { %v182_v56 = vpop.f32.mrf.mxu0  ;;  %v1640_v57 = vpop.f32.mrf.mxu1 }
 0x113   :  { %v285_v58 = vmul.f32 0.01, %v263_v55  ;;  %v183_v59 = vadd.f32 %v1509_v49, %v182_v56  ;;  %vm281_vm1 = vcmp.gt.f32.partialorder %v263_v55, 0.0 }
 0x114   :  { %v184_v60 = vpop.f32.mrf.mxu0  ;;  %v272_v0 = vpop.f32.mrf.mxu1 }
 0x115   :  { %v268_v61 = vadd.f32 %v1637_v51, %v183_v59  ;;  %v289_v62 = vsel %vm281_vm1, %v263_v55, %v285_v58 }
 0x116   :  { %v187_v63 = vpop.f32.mrf.mxu0  ;;  %293 = vst [vmem:[#allocation2 + $0x1] sm:$0xff] %v289_v62  ;;  %423 = vmatprep.mubr.f32.mxu0 %v289_v62 }
 0x117   :  { %v188_v1 = vadd.f32 %v1509_v49, %v187_v63  ;;  %vm282_vm2 = vcmp.gt.f32.partialorder %v268_v61, 0.0  ;;  %v286_v2 = vmul.f32 0.01, %v268_v61 }
 0x118   :  { %v189_v3 = vpop.f32.mrf.mxu0 }
 0x119   :  { %v273_v4 = vadd.f32 %v272_v0, %v188_v1  ;;  %v290_v5 = vsel %vm282_vm2, %v268_v61, %v286_v2 }
 0x11a   :  { %v192_v6 = vpop.f32.mrf.mxu0  ;;  %294 = vst [vmem:[#allocation2 + $0x9] sm:$0xff] %v290_v5 }
 0x11b   :  { %v287_v7 = vmul.f32 0.01, %v273_v4  ;;  %v193_v8 = vadd.f32 %v1509_v49, %v192_v6  ;;  %vm283_vm3 = vcmp.gt.f32.partialorder %v273_v4, 0.0 }
 0x11c   :  { %v194_v9 = vpop.f32.mrf.mxu0 }
 0x11d   :  { %v278_v10 = vadd.f32 %v1640_v57, %v193_v8  ;;  %v297_v11 = vld [vmem:[#allocation2] sm:$0xff]  ;;  %v291_v12 = vsel %vm283_vm3, %v273_v4, %v287_v7 }
 0x11e   :  { %424 = vmatmul.mubr.f32.vlgmr.msra.gmra.mxu0 %v297_v11  ;;  %295 = vst [vmem:[#allocation2 + $0x19] sm:$0xff] %v291_v12  ;;  %v1871_v11 = vld [vmem:[#allocation3 + $0x328] sm:$0xff] }
 0x11f   :  { %428 = vmatprep.mubr.f32.mxu0 %v290_v5  ;;  %vm284_vm4 = vcmp.gt.f32.partialorder %v278_v10, 0.0  ;;  %v288_v13 = vmul.f32 0.01, %v278_v10 }
 0x121   :  { %v298_v14 = vld [vmem:[#allocation2 + $0x8] sm:$0xff]  ;;  %v292_v17 = vsel %vm284_vm4, %v278_v10, %v288_v13  ;;  %v1869_v10 = vld [vmem:[#allocation3 + $0x300] sm:$0xff] }
 0x122   :  { %v301_v15 = vld [vmem:[#allocation2 + $0x2] sm:$0xff]  ;;  %v302_v16 = vld [vmem:[#allocation2 + $0xa] sm:$0xff]  ;;  %429 = vmatmul.mubr.f32.gmra.mxu0 %v298_v14  ;;  %296 = vst [vmem:[#allocation2 + $0x21] sm:$0xff] %v292_v17 }
 0x123   :  { %1673 = vmatprep.mubr.f32.mxu1 %v301_v15  ;;  %433 = vmatprep.mubr.f32.mxu0 %v291_v12  ;;  %v1875_v15 = vld [vmem:[#allocation3 + $0x320] sm:$0xff] }
 0x124   :  { %1674 = vmatmul.mubr.f32.vlgmr.msra.gmra.mxu1 %v302_v16  ;;  %v1877_v16 = vld [vmem:[#allocation3 + $0x340] sm:$0xff] }
 0x125   :  { %v299_v18 = vld [vmem:[#allocation2 + $0x18] sm:$0xff] }
 0x126   :  { %434 = vmatmul.mubr.f32.gmra.mxu0 %v299_v18  ;;  %v1881_v18 = vld [vmem:[#allocation3 + $0x358] sm:$0xff] }
 0x127   :  { %438 = vmatprep.mubr.f32.mxu0 %v292_v17  ;;  %v1879_v17 = vld [vmem:[#allocation3 + $0x318] sm:$0xff] }
 0x129   :  { %v300_v19 = vld [vmem:[#allocation2 + $0x20] sm:$0xff] }
 0x12a   :  { %v303_v20 = vld [vmem:[#allocation2 + $0x1a] sm:$0xff]  ;;  %v304_v21 = vld [vmem:[#allocation2 + $0x22] sm:$0xff]  ;;  %439 = vmatmul.mubr.f32.gmra.mxu0 %v300_v19 }
 0x12b   :  { %1676 = vmatprep.mubr.f32.mxu1 %v303_v20  ;;  %1683 = vmatprep.mubr.f32.mxu0 %v1814_v23  ;;  %v1883_v19 = vld [vmem:[#allocation3 + $0x338] sm:$0xff] }
 0x12c   :  { %1677 = vmatmul.mubr.f32.gmra.mxu1 %v304_v21  ;;  %v1888_v21 = vld [vmem:[#allocation3 + $0x370] sm:$0xff] }
 0x12d   :  { %762 = vmatprep.mubr.f32.mxu1 %v1812_v22 }
 0x1de   :  { %v425_v41 = vpop.f32.mrf.mxu0 }
 0x1df   :  { %v426_v47 = vadd.f32 %v1510_v43, %v425_v41  ;;  %v1923_v41 = vld [vmem:[#allocation3 + $0x448] sm:$0xff] }
 0x1e0   :  { %v427_v42 = vpop.f32.mrf.mxu0 }
 0x1e1   :  { %v576_v42 = vld [vmem:[#allocation3 + $0x3b0] sm:$0xff] }
 0x1e2   :  { %v430_v44 = vpop.f32.mrf.mxu0 }
 0x1e3   :  { %v431_v45 = vadd.f32 %v1510_v43, %v430_v44  ;;  %v575_v44 = vld [vmem:[#allocation3 + $0x3a8] sm:$0xff] }
 0x1e4   :  { %v1675_v46 = vpop.f32.mrf.mxu1  ;;  %v432_v48 = vpop.f32.mrf.mxu0 }
 0x1e5   :  { %v516_v49 = vadd.f32 %v1675_v46, %v431_v45  ;;  %v1929_v45 = vld [vmem:[#allocation3 + $0x478] sm:$0xff]  ;;  %v579_v46 = vld [vmem:[#allocation3 + $0x3c8] sm:$0xff]  ;;  %v582_v48 = vld [vmem:[#allocation3 + $0x3e0] sm:$0xff] }
 0x1e6   :  { %v510_v50 = vpop.f32.mrf.mxu1  ;;  %v435_v52 = vpop.f32.mrf.mxu0 }
 0x1e7   :  { %v511_v51 = vadd.f32 %v510_v50, %v426_v47  ;;  %v534_v53 = vmul.f32 0.01, %v516_v49  ;;  %vm530_vm5 = vcmp.gt.f32.partialorder %v516_v49, 0.0  ;;  %v436_v58 = vadd.f32 %v1510_v43, %v435_v52  ;;  %v578_v47 = vld [vmem:[#allocation3 + $0x3c0] sm:$0xff]  ;;  %v585_v50 = vld [vmem:[#allocation3 + $0x3f8] sm:$0xff]  ;;  %v588_v52 = vld [vmem:[#allocation3 + $0x410] sm:$0xff] }
 0x1e8   :  { %v437_v55 = vpop.f32.mrf.mxu0 }
 0x1e9   :  { %vm529_vm6 = vcmp.gt.f32.partialorder %v511_v51, 0.0  ;;  %v533_v54 = vmul.f32 0.01, %v511_v51  ;;  %v538_v56 = vsel %vm530_vm5, %v516_v49, %v534_v53  ;;  %v581_v49 = vld [vmem:[#allocation3 + $0x3d8] sm:$0xff]  ;;  %v591_v53 = vld [vmem:[#allocation3 + $0x428] sm:$0xff]  ;;  %v594_v55 = vld [vmem:[#allocation3 + $0x440] sm:$0xff] }
 0x1ea   :  { %v440_v59 = vpop.f32.mrf.mxu0  ;;  %542 = vst [vmem:[#allocation2 + $0x9] sm:$0xff] %v538_v56  ;;  %726 = vmatprep.subr.mxu1 %v538_v56  ;;  %v593_v56 = vld [vmem:[#allocation3 + $0x438] sm:$0xff] }
 0x1eb   :  { %v537_v57 = vsel %vm529_vm6, %v511_v51, %v533_v54  ;;  %v441_v60 = vadd.f32 %v1510_v43, %v440_v59  ;;  %v1925_v43 = vld [vmem:[#allocation3 + $0x460] sm:$0xff]  ;;  %v584_v51 = vld [vmem:[#allocation3 + $0x3f0] sm:$0xff] }
 0x1ec   :  { %541 = vst [vmem:[#allocation2 + $0x1] sm:$0xff] %v537_v57  ;;  %v1678_v61 = vpop.f32.mrf.mxu1  ;;  %v442_v62 = vpop.f32.mrf.mxu0  ;;  %v590_v54 = vld [vmem:[#allocation3 + $0x420] sm:$0xff]  ;;  %v600_v59 = vld [vmem:[#allocation3 + $0x470] sm:$0xff] }
 0x1ed   :  { %v526_v63 = vadd.f32 %v1678_v61, %v441_v60  ;;  %v599_v60 = vld [vmem:[#allocation3 + $0x468] sm:$0xff] }
 0x1ee   :  { %v520_v0 = vpop.f32.mrf.mxu1 }
 0x1ef   :  { %v521_v1 = vadd.f32 %v520_v0, %v436_v58  ;;  %v536_v2 = vmul.f32 0.01, %v526_v63  ;;  %vm532_vm7 = vcmp.gt.f32.partialorder %v526_v63, 0.0  ;;  %v596_v58 = vld [vmem:[#allocation3 + $0x450] sm:$0xff] }
 0x1f1   :  { %vm531_vm8 = vcmp.gt.f32.partialorder %v521_v1, 0.0  ;;  %v535_v3 = vmul.f32 0.01, %v521_v1  ;;  %v550_v4 = vld [vmem:[#allocation2 + $0xa] sm:$0xff]  ;;  %v540_v5 = vsel %vm532_vm7, %v526_v63, %v536_v2  ;;  %v631_v63 = vpop.permute.xlu1 %630 }
 0x1f2   :  { %1679 = vmatprep.subr.mxu0 %v550_v4  ;;  %544 = vst [vmem:[#allocation2 + $0x21] sm:$0xff] %v540_v5 }
 0x1f3   :  { %v539_v6 = vsel %vm531_vm8, %v521_v1, %v535_v3  ;;  %v546_v7 = vld [vmem:[#allocation2 + $0x8] sm:$0xff]  ;;  %1680 = vmatpush3.xpose.msra.mxu0 %v550_v4  ;;  %v545_v9 = vld [vmem:[#allocation2] sm:$0xff] }
 0x1f4   :  { %v549_v8 = vld [vmem:[#allocation2 + $0x2] sm:$0xff]  ;;  %543 = vst [vmem:[#allocation2 + $0x19] sm:$0xff] %v539_v6  ;;  %727 = vmatpush1.xpose.msra.mxu1 %v546_v7 }
 0x1f5   :  { %728 = vmatprep.subr.mxu1 %v537_v57  ;;  %1681 = vmatprep.subr.mxu0 %v549_v8  ;;  %v597_v57 = vld [vmem:[#allocation3 + $0x458] sm:$0xff] }
 0x1f7   :  { %1682 = vmatpush3.xpose.msra.mxu0 %v549_v8 }
 0x1f8   :  { %729 = vmatpush1.xpose.msra.mxu1 %v545_v9  ;;  %1177 = vmatprep.subr.mxu0 %v540_v5 }
 0x1f9   :  { %v552_v12 = vld [vmem:[#allocation2 + $0x22] sm:$0xff] }
 0x1fa   :  { %1684 = vmatmul.mubr.f32.vlgmr.msra.gmra.mxu0 %v1871_v11  ;;  %1707 = vmatprep.subr.mxu1 %v552_v12 }
 0x1fb   :  { %763 = vmatmul.mubr.f32.vlgmr.msra.gmra.mxu1 %v1869_v10  ;;  %v548_v13 = vld [vmem:[#allocation2 + $0x20] sm:$0xff]  ;;  %v547_v20 = vld [vmem:[#allocation2 + $0x18] sm:$0xff]  ;;  %1686 = vmatprep.mubr.f32.mxu0 %v1877_v16 }
 0x1fc   :  { %v551_v14 = vld [vmem:[#allocation2 + $0x1a] sm:$0xff]  ;;  %1178 = vmatpush1.xpose.msra.mxu0 %v548_v13  ;;  %1708 = vmatpush3.xpose.msra.mxu1 %v552_v12 }
 0x1fd   :  { %1179 = vmatprep.subr.mxu0 %v539_v6  ;;  %1709 = vmatprep.subr.mxu1 %v551_v14 }
 0x1fe   :  { %767 = vmatprep.mubr.f32.mxu1 %v1875_v15  ;;  %1687 = vmatmul.mubr.f32.gmra.mxu0 %v1881_v18 }
 0x1ff   :  { %768 = vmatmul.mubr.f32.gmra.mxu1 %v1879_v17  ;;  %1689 = vmatprep.mubr.f32.mxu0 %v1888_v21 }
 0x200   :  { %772 = vmatprep.mubr.f32.mxu1 %v1883_v19  ;;  %1180 = vmatpush1.xpose.msra.mxu0 %v547_v20 }
 0x201   :  { %1710 = vmatpush3.xpose.msra.mxu1 %v551_v14 }
 0x202   :  { %1690 = vmatmul.mubr.f32.gmra.mxu0 %v1894_v25 }
 0x203   :  { %773 = vmatmul.mubr.f32.gmra.mxu1 %v1892_v24  ;;  %1692 = vmatprep.mubr.f32.mxu0 %v1899_v27 }
 0x204   :  { %777 = vmatprep.mubr.f32.mxu1 %v1896_v26 }
 0x206   :  { %1693 = vmatmul.mubr.f32.gmra.mxu0 %v1905_v29 }
 0x207   :  { %778 = vmatmul.mubr.f32.gmra.mxu1 %v563_v28  ;;  %1695 = vmatprep.mubr.f32.mxu0 %v1907_v31 }
 0x208   :  { %782 = vmatprep.mubr.f32.mxu1 %v567_v30 }
 0x20a   :  { %1696 = vmatmul.mubr.f32.gmra.mxu0 %v1911_v33 }
 0x20b   :  { %783 = vmatmul.mubr.f32.gmra.mxu1 %v566_v32  ;;  %1698 = vmatprep.mubr.f32.mxu0 %v1913_v35 }
 0x20c   :  { %787 = vmatprep.mubr.f32.mxu1 %v570_v34 }
 0x20e   :  { %1699 = vmatmul.mubr.f32.gmra.mxu0 %v1917_v37 }
 0x20f   :  { %788 = vmatmul.mubr.f32.gmra.mxu1 %v569_v36  ;;  %1701 = vmatprep.mubr.f32.mxu0 %v1919_v39 }
 0x210   :  { %792 = vmatprep.mubr.f32.mxu1 %v573_v38 }
 0x212   :  { %1702 = vmatmul.mubr.f32.gmra.mxu0 %v1923_v41 }
 0x213   :  { %793 = vmatmul.mubr.f32.gmra.mxu1 %v572_v40  ;;  %1704 = vmatprep.mubr.f32.mxu0 %v1925_v43 }
 0x214   :  { %797 = vmatprep.mubr.f32.mxu1 %v576_v42 }
 0x216   :  { %1705 = vmatmul.mubr.f32.gmra.mxu0 %v1929_v45 }
 0x217   :  { %798 = vmatmul.mubr.f32.gmra.mxu1 %v575_v44  ;;  %1213 = vmatprep.mubr.f32.mxu0 %v1812_v22  ;;  %v587_v22 = vld [vmem:[#allocation3 + $0x408] sm:$0xff] }
 0x218   :  { %802 = vmatprep.mubr.f32.mxu1 %v579_v46 }
 0x21a   :  { %1214 = vmatmul.mubr.f32.vlgmr.msra.gmra.mxu0 %v1869_v10  ;;  %v636_v10 = vpop.permute.xlu1 %635 }
 0x21b   :  { %803 = vmatmul.mubr.f32.gmra.mxu1 %v578_v47  ;;  %1218 = vmatprep.mubr.f32.mxu0 %v1875_v15 }
 0x21c   :  { %807 = vmatprep.mubr.f32.mxu1 %v582_v48 }
 0x21e   :  { %1219 = vmatmul.mubr.f32.gmra.mxu0 %v1879_v17 }
 0x21f   :  { %808 = vmatmul.mubr.f32.gmra.mxu1 %v581_v49  ;;  %1223 = vmatprep.mubr.f32.mxu0 %v1883_v19 }
 0x220   :  { %812 = vmatprep.mubr.f32.mxu1 %v585_v50 }
 0x222   :  { %1224 = vmatmul.mubr.f32.gmra.mxu0 %v1892_v24 }
 0x223   :  { %813 = vmatmul.mubr.f32.gmra.mxu1 %v584_v51  ;;  %1228 = vmatprep.mubr.f32.mxu0 %v1896_v26 }
 0x224   :  { %817 = vmatprep.mubr.f32.mxu1 %v588_v52 }
 0x226   :  { %1229 = vmatmul.mubr.f32.gmra.mxu0 %v563_v28 }
 0x227   :  { %818 = vmatmul.mubr.f32.gmra.mxu1 %v587_v22  ;;  %1233 = vmatprep.mubr.f32.mxu0 %v567_v30 }
 0x228   :  { %822 = vmatprep.mubr.f32.mxu1 %v591_v53 }
 0x22a   :  { %1234 = vmatmul.mubr.f32.gmra.mxu0 %v566_v32 }
 0x22b   :  { %823 = vmatmul.mubr.f32.gmra.mxu1 %v590_v54  ;;  %1238 = vmatprep.mubr.f32.mxu0 %v570_v34 }
 0x22c   :  { %827 = vmatprep.mubr.f32.mxu1 %v594_v55 }
 0x22e   :  { %1239 = vmatmul.mubr.f32.gmra.mxu0 %v569_v36 }
 0x22f   :  { %828 = vmatmul.mubr.f32.gmra.mxu1 %v593_v56  ;;  %1243 = vmatprep.mubr.f32.mxu0 %v573_v38 }
 0x230   :  { %832 = vmatprep.mubr.f32.mxu1 %v597_v57 }
 0x232   :  { %1244 = vmatmul.mubr.f32.gmra.mxu0 %v572_v40 }
 0x233   :  { %833 = vmatmul.mubr.f32.gmra.mxu1 %v596_v58  ;;  %1248 = vmatprep.mubr.f32.mxu0 %v576_v42 }
 0x234   :  { %837 = vmatprep.mubr.f32.mxu1 %v600_v59 }
 0x236   :  { %1249 = vmatmul.mubr.f32.gmra.mxu0 %v575_v44 }
 0x237   :  { %838 = vmatmul.mubr.f32.gmra.mxu1 %v599_v60  ;;  %1253 = vmatprep.mubr.f32.mxu0 %v579_v46 }
 0x238   :  { %1711 = vmatprep.mubr.f32.mxu1 %v1814_v23  ;;  %v621_v23 = vpop.permute.xlu0 %620 }
 0x23a   :  { %1254 = vmatmul.mubr.f32.gmra.mxu0 %v578_v47 }
 0x23b   :  { %1712 = vmatmul.mubr.f32.vlgmr.msra.gmra.mxu1 %v1871_v11  ;;  %1258 = vmatprep.mubr.f32.mxu0 %v582_v48 }
 0x23c   :  { %1714 = vmatprep.mubr.f32.mxu1 %v1877_v16  ;;  %v626_v4 = vpop.permute.xlu0 %625 }
 0x23e   :  { %1259 = vmatmul.mubr.f32.gmra.mxu0 %v581_v49 }
 0x23f   :  { %1715 = vmatmul.mubr.f32.gmra.mxu1 %v1881_v18  ;;  %1263 = vmatprep.mubr.f32.mxu0 %v585_v50 }
 0x240   :  { %1717 = vmatprep.mubr.f32.mxu1 %v1888_v21 }
 0x242   :  { %1264 = vmatmul.mubr.f32.gmra.mxu0 %v584_v51 }
 0x243   :  { %1718 = vmatmul.mubr.f32.gmra.mxu1 %v1894_v25  ;;  %1268 = vmatprep.mubr.f32.mxu0 %v588_v52  ;;  %v646_v25 = vpop.permute.xlu1 %645 }
 0x244   :  { %1720 = vmatprep.mubr.f32.mxu1 %v1899_v27 }
 0x246   :  { %1269 = vmatmul.mubr.f32.gmra.mxu0 %v587_v22 }
 0x247   :  { %1721 = vmatmul.mubr.f32.gmra.mxu1 %v1905_v29  ;;  %1273 = vmatprep.mubr.f32.mxu0 %v591_v53  ;;  %v641_v29 = vpop.permute.xlu0 %640 }
 0x248   :  { %1723 = vmatprep.mubr.f32.mxu1 %v1907_v31 }
 0x24a   :  { %1274 = vmatmul.mubr.f32.gmra.mxu0 %v590_v54 }
 0x24b   :  { %1724 = vmatmul.mubr.f32.gmra.mxu1 %v1911_v33  ;;  %1278 = vmatprep.mubr.f32.mxu0 %v594_v55 }
 0x24c   :  { %1726 = vmatprep.mubr.f32.mxu1 %v1913_v35 }
 0x24e   :  { %1279 = vmatmul.mubr.f32.gmra.mxu0 %v593_v56 }
 0x24f   :  { %1727 = vmatmul.mubr.f32.gmra.mxu1 %v1917_v37  ;;  %1283 = vmatprep.mubr.f32.mxu0 %v597_v57 }
 0x250   :  { %1729 = vmatprep.mubr.f32.mxu1 %v1919_v39  ;;  %v656_v39 = vpop.permute.xlu1 %655 }
 0x252   :  { %1284 = vmatmul.mubr.f32.gmra.mxu0 %v596_v58 }
 0x253   :  { %1730 = vmatmul.mubr.f32.gmra.mxu1 %v1923_v41  ;;  %1288 = vmatprep.mubr.f32.mxu0 %v600_v59 }
 0x254   :  { %1732 = vmatprep.mubr.f32.mxu1 %v1925_v43  ;;  %v651_v43 = vpop.permute.xlu0 %650  ;;  %v666_v22 = vpop.permute.xlu1 %665 }
 0x256   :  { %1289 = vmatmul.mubr.f32.gmra.mxu0 %v599_v60 }
 0x257   :  { %1733 = vmatmul.mubr.f32.gmra.mxu1 %v1929_v45 }
 0x258   :  { %v661_v56 = vpop.permute.xlu0 %660 }
 0x2ba   :  { %v1685_v62 = vpop.f32.mrf.mxu0 }
 0x2bb   :  { %v764_v61 = vpop.f32.mrf.mxu1 }
 0x2bc   :  { %v765_v0 = vadd.f32 %v764_v61, %v621_v23  ;;  %v909_v2 = vpop.f32.mrf.mxu0 }
 0x2bd   :  { %v766_v1 = vpop.f32.mrf.mxu1 }
 0x2be   :  { %v910_v3 = vadd.f32 %v909_v2, %v765_v0  ;;  %v1688_v8 = vpop.f32.mrf.mxu0  ;;  %v676_v1 = vpop.permute.xlu1 %675 }
 0x2bf   :  { %v769_v5 = vpop.f32.mrf.mxu1 }
 0x2c0   :  { %vm988_vm9 = vcmp.gt.f32.partialorder %v910_v3, 0.0  ;;  %v1004_v6 = vmul.f32 0.01, %v910_v3  ;;  %v770_v7 = vadd.f32 %v769_v5, %v626_v4  ;;  %v919_v13 = vpop.f32.mrf.mxu0  ;;  %v671_v5 = vpop.permute.xlu0 %670 }
 0x2c1   :  { %v771_v9 = vpop.f32.mrf.mxu1 }
 0x2c2   :  { %v1020_v11 = vsel %vm988_vm9, %v910_v3, %v1004_v6  ;;  %v915_v12 = vadd.f32 %v1685_v62, %v770_v7  ;;  %v1691_v17 = vpop.f32.mrf.mxu0 }
 0x2c3   :  { %1037 = vst.msk [vmem:[%s2120_s4] sm:$0xff] %vm1036_vm10, %v1020_v11  ;;  %v774_v14 = vpop.f32.mrf.mxu1 }
 0x2c4   :  { %vm989_vm11 = vcmp.gt.f32.partialorder %v915_v12, 0.0  ;;  %v1005_v15 = vmul.f32 0.01, %v915_v12  ;;  %v775_v16 = vadd.f32 %v774_v14, %v631_v63  ;;  %v929_v21 = vpop.f32.mrf.mxu0 }
 0x2c5   :  { %v776_v18 = vpop.f32.mrf.mxu1 }
 0x2c6   :  { %v1021_v19 = vsel %vm989_vm11, %v915_v12, %v1005_v15  ;;  %v920_v20 = vadd.f32 %v919_v13, %v775_v16  ;;  %v1694_v28 = vpop.f32.mrf.mxu0  ;;  %v686_v15 = vpop.permute.xlu1 %685 }
 0x2c7   :  { %1038 = vst.msk [vmem:[%s2120_s4 + $0x8] sm:$0xff] %vm1036_vm10, %v1021_v19  ;;  %v779_v24 = vpop.f32.mrf.mxu1  ;;  %v681_v19 = vpop.permute.xlu0 %680 }
 0x2c8   :  { %vm990_vm12 = vcmp.gt.f32.partialorder %v920_v20, 0.0  ;;  %v1006_v26 = vmul.f32 0.01, %v920_v20  ;;  %v780_v27 = vadd.f32 %v779_v24, %v636_v10  ;;  %v939_v33 = vpop.f32.mrf.mxu0 }
 0x2c9   :  { %v781_v30 = vpop.f32.mrf.mxu1 }
 0x2ca   :  { %v1022_v31 = vsel %vm990_vm12, %v920_v20, %v1006_v26  ;;  %v925_v32 = vadd.f32 %v1688_v8, %v780_v27  ;;  %v1697_v37 = vpop.f32.mrf.mxu0 }
 0x2cb   :  { %1039 = vst.msk [vmem:[%s2120_s4 + $0x10] sm:$0xff] %vm1036_vm10, %v1022_v31  ;;  %v784_v34 = vpop.f32.mrf.mxu1  ;;  %v696_v31 = vpop.permute.xlu1 %695 }
 0x2cc   :  { %vm991_vm13 = vcmp.gt.f32.partialorder %v925_v32, 0.0  ;;  %v1007_v35 = vmul.f32 0.01, %v925_v32  ;;  %v785_v36 = vadd.f32 %v784_v34, %v641_v29  ;;  %v949_v42 = vpop.f32.mrf.mxu0 }
 0x2cd   :  { %v786_v38 = vpop.f32.mrf.mxu1 }
 0x2ce   :  { %v1023_v40 = vsel %vm991_vm13, %v925_v32, %v1007_v35  ;;  %v930_v41 = vadd.f32 %v929_v21, %v785_v36  ;;  %v1971_v47 = vpop.f32.mrf.mxu0  ;;  %v691_v35 = vpop.permute.xlu0 %690 }
 0x2cf   :  { %1040 = vst.msk [vmem:[%s2120_s4 + $0x18] sm:$0xff] %vm1036_vm10, %v1023_v40  ;;  %v789_v44 = vpop.f32.mrf.mxu1 }
 0x2d0   :  { %vm992_vm14 = vcmp.gt.f32.partialorder %v930_v41, 0.0  ;;  %v1008_v45 = vmul.f32 0.01, %v930_v41  ;;  %v790_v46 = vadd.f32 %v789_v44, %v646_v25  ;;  %v959_v51 = vpop.f32.mrf.mxu0 }
 0x2d1   :  { %v791_v48 = vpop.f32.mrf.mxu1 }
 0x2d2   :  { %v1024_v49 = vsel %vm992_vm14, %v930_v41, %v1008_v45  ;;  %v935_v50 = vadd.f32 %v1691_v17, %v790_v46  ;;  %v1977_v55 = vpop.f32.mrf.mxu0  ;;  %v1077_v45 = vpop.permute.xlu1 %1076 }
 0x2d3   :  { %1041 = vst.msk [vmem:[%s2120_s4 + $0x20] sm:$0xff] %vm1036_vm10, %v1024_v49  ;;  %v794_v52 = vpop.f32.mrf.mxu1 }
 0x2d4   :  { %vm993_vm15 = vcmp.gt.f32.partialorder %v935_v50, 0.0  ;;  %v1009_v53 = vmul.f32 0.01, %v935_v50  ;;  %v795_v54 = vadd.f32 %v794_v52, %v651_v43  ;;  %v1979_v60 = vpop.f32.mrf.mxu0 }
 0x2d5   :  { %v796_v57 = vpop.f32.mrf.mxu1 }
 0x2d6   :  { %v1025_v58 = vsel %vm993_vm15, %v935_v50, %v1009_v53  ;;  %v940_v59 = vadd.f32 %v939_v33, %v795_v54  ;;  %v1985_v63 = vpop.f32.mrf.mxu0  ;;  %v1072_v50 = vpop.permute.xlu0 %1071 }
 0x2d7   :  { %1042 = vst.msk [vmem:[%s2120_s4 + $0x28] sm:$0xff] %vm1036_vm10, %v1025_v58  ;;  %v799_v23 = vpop.f32.mrf.mxu1 }
 0x2d8   :  { %vm994_vm0 = vcmp.gt.f32.partialorder %v940_v59, 0.0  ;;  %v1010_v61 = vmul.f32 0.01, %v940_v59  ;;  %v800_v62 = vadd.f32 %v799_v23, %v656_v39  ;;  %v1987_v4 = vpop.f32.mrf.mxu0 }
 0x2d9   :  { %v801_v0 = vpop.f32.mrf.mxu1 }
 0x2da   :  { %v1026_v2 = vsel %vm994_vm0, %v940_v59, %v1010_v61  ;;  %v945_v3 = vadd.f32 %v1694_v28, %v800_v62  ;;  %v1993_v9 = vpop.f32.mrf.mxu0  ;;  %v1087_v59 = vpop.permute.xlu1 %1086 }
 0x2db   :  { %1043 = vst.msk [vmem:[%s2120_s4 + $0x30] sm:$0xff] %vm1036_vm10, %v1026_v2  ;;  %v804_v6 = vpop.f32.mrf.mxu1  ;;  %v1082_v0 = vpop.permute.xlu0 %1081 }
 0x2dc   :  { %vm995_vm1 = vcmp.gt.f32.partialorder %v945_v3, 0.0  ;;  %v1011_v7 = vmul.f32 0.01, %v945_v3  ;;  %v805_v8 = vadd.f32 %v804_v6, %v661_v56  ;;  %v1217_v13 = vpop.f32.mrf.mxu0 }
 0x2dd   :  { %v806_v10 = vpop.f32.mrf.mxu1 }
 0x2de   :  { %v1027_v11 = vsel %vm995_vm1, %v945_v3, %v1011_v7  ;;  %v950_v12 = vadd.f32 %v949_v42, %v805_v8  ;;  %v1999_v18 = vpop.f32.mrf.mxu0  ;;  %v1097_v10 = vpop.permute.xlu1 %1096 }
 0x2df   :  { %1044 = vst.msk [vmem:[%s2120_s4 + $0x38] sm:$0xff] %vm1036_vm10, %v1027_v11  ;;  %v809_v14 = vpop.f32.mrf.mxu1 }
 0x2e0   :  { %vm996_vm2 = vcmp.gt.f32.partialorder %v950_v12, 0.0  ;;  %v1012_v16 = vmul.f32 0.01, %v950_v12  ;;  %v810_v17 = vadd.f32 %v809_v14, %v666_v22  ;;  %v1222_v25 = vpop.f32.mrf.mxu0  ;;  %v1092_v14 = vpop.permute.xlu0 %1091 }
 0x2e1   :  { %v811_v20 = vpop.f32.mrf.mxu1 }
 0x2e2   :  { %v1028_v21 = vsel %vm996_vm2, %v950_v12, %v1012_v16  ;;  %v955_v24 = vadd.f32 %v1697_v37, %v810_v17  ;;  %v2005_v29 = vpop.f32.mrf.mxu0  ;;  %v1221_v16 = vadd.f32 %v1999_v18, %v1077_v45  ;;  %v1107_v18 = vpop.permute.xlu1 %1106 }
 0x2e3   :  { %1045 = vst.msk [vmem:[%s2120_s4 + $0x40] sm:$0xff] %vm1036_vm10, %v1028_v21  ;;  %v814_v26 = vpop.f32.mrf.mxu1  ;;  %v1216_v21 = vadd.f32 %v1993_v9, %v1072_v50 }
 0x2e4   :  { %vm997_vm3 = vcmp.gt.f32.partialorder %v955_v24, 0.0  ;;  %v1013_v27 = vmul.f32 0.01, %v955_v24  ;;  %v815_v28 = vadd.f32 %v814_v26, %v671_v5  ;;  %v1227_v34 = vpop.f32.mrf.mxu0 }
 0x2e5   :  { %v816_v30 = vpop.f32.mrf.mxu1  ;;  %v1226_v34 = vadd.f32 %v2005_v29, %v1082_v0 }
 0x2e6   :  { %v1029_v32 = vsel %vm997_vm3, %v955_v24, %v1013_v27  ;;  %v960_v33 = vadd.f32 %v959_v51, %v815_v28  ;;  %v1230_v39 = vpop.f32.mrf.mxu0 }
 0x2e7   :  { %1046 = vst.msk [vmem:[%s2120_s4 + $0x48] sm:$0xff] %vm1036_vm10, %v1029_v32  ;;  %v819_v36 = vpop.f32.mrf.mxu1  ;;  %v1231_v27 = vadd.f32 %v1230_v39, %v1087_v59 }
 0x2e8   :  { %vm998_vm4 = vcmp.gt.f32.partialorder %v960_v33, 0.0  ;;  %v1014_v37 = vmul.f32 0.01, %v960_v33  ;;  %v820_v38 = vadd.f32 %v819_v36, %v676_v1  ;;  %v1232_v43 = vpop.f32.mrf.mxu0 }
 0x2e9   :  { %v821_v40 = vpop.f32.mrf.mxu1 }
 0x2ea   :  { %v1030_v41 = vsel %vm998_vm4, %v960_v33, %v1014_v37  ;;  %v965_v42 = vadd.f32 %v1971_v47, %v820_v38  ;;  %v2016_v49 = vpop.f32.mrf.mxu0  ;;  %v1102_v33 = vpop.permute.xlu0 %1101 }
 0x2eb   :  { %1047 = vst.msk [vmem:[%s2120_s4 + $0x50] sm:$0xff] %vm1036_vm10, %v1030_v41  ;;  %v824_v44 = vpop.f32.mrf.mxu1 }
 0x2ec   :  { %vm999_vm5 = vcmp.gt.f32.partialorder %v965_v42, 0.0  ;;  %v1015_v46 = vmul.f32 0.01, %v965_v42  ;;  %v825_v48 = vadd.f32 %v824_v44, %v681_v19  ;;  %v1237_v53 = vpop.f32.mrf.mxu0  ;;  %v1236_v44 = vadd.f32 %v2016_v49, %v1092_v14 }
 0x2ed   :  { %v826_v51 = vpop.f32.mrf.mxu1 }
 0x2ee   :  { %v1031_v52 = vsel %vm999_vm5, %v965_v42, %v1015_v46  ;;  %v970_v22 = vadd.f32 %v1979_v60, %v825_v48  ;;  %v1240_v57 = vpop.f32.mrf.mxu0  ;;  %v1117_v46 = vpop.permute.xlu1 %1116 }
 0x2ef   :  { %1048 = vst.msk [vmem:[%s2120_s4 + $0x58] sm:$0xff] %vm1036_vm10, %v1031_v52  ;;  %v829_v47 = vpop.f32.mrf.mxu1  ;;  %v1241_v39 = vadd.f32 %v1240_v57, %v1097_v10 }
 0x2f0   :  { %vm1000_vm6 = vcmp.gt.f32.partialorder %v970_v22, 0.0  ;;  %v1016_v54 = vmul.f32 0.01, %v970_v22  ;;  %v830_v56 = vadd.f32 %v829_v47, %v686_v15  ;;  %v1242_v62 = vpop.f32.mrf.mxu0 }
 0x2f1   :  { %v831_v58 = vpop.f32.mrf.mxu1 }
 0x2f2   :  { %v1032_v23 = vsel %vm1000_vm6, %v970_v22, %v1016_v54  ;;  %v975_v61 = vadd.f32 %v1977_v55, %v830_v56  ;;  %v2028_v3 = vpop.f32.mrf.mxu0  ;;  %v1112_v22 = vpop.permute.xlu0 %1111 }
 0x2f3   :  { %1049 = vst.msk [vmem:[%s2120_s4 + $0x60] sm:$0xff] %vm1036_vm10, %v1032_v23  ;;  %v834_v60 = vpop.f32.mrf.mxu1  ;;  %v1246_v58 = vadd.f32 %v2028_v3, %v1102_v33 }
 0x2f4   :  { %vm1001_vm7 = vcmp.gt.f32.partialorder %v975_v61, 0.0  ;;  %v1017_v1 = vmul.f32 0.01, %v975_v61  ;;  %v835_v2 = vadd.f32 %v834_v60, %v691_v35  ;;  %v1247_v8 = vpop.f32.mrf.mxu0 }
 0x2f5   :  { %v836_v5 = vpop.f32.mrf.mxu1 }
 0x2f6   :  { %v1033_v6 = vsel %vm1001_vm7, %v975_v61, %v1017_v1  ;;  %v980_v7 = vadd.f32 %v1987_v4, %v835_v2  ;;  %v1250_v13 = vpop.f32.mrf.mxu0  ;;  %v1127_v2 = vpop.permute.xlu1 %1126 }
 0x2f7   :  { %1050 = vst.msk [vmem:[%s2120_s4 + $0x68] sm:$0xff] %vm1036_vm10, %v1033_v6  ;;  %v839_v55 = vpop.f32.mrf.mxu1  ;;  %v1251_v53 = vadd.f32 %v1250_v13, %v1107_v18  ;;  %v1122_v8 = vpop.permute.xlu0 %1121 }
 0x2f8   :  { %vm1002_vm8 = vcmp.gt.f32.partialorder %v980_v7, 0.0  ;;  %v1018_v11 = vmul.f32 0.01, %v980_v7  ;;  %v840_v12 = vadd.f32 %v839_v55, %v696_v31  ;;  %v1252_v4 = vpop.f32.mrf.mxu0 }
 0x2f9   :  { %v841_v15 = vpop.f32.mrf.mxu1 }
 0x2fa   :  { %v1034_v17 = vsel %vm1002_vm8, %v980_v7, %v1018_v11  ;;  %v985_v19 = vadd.f32 %v1985_v63, %v840_v12  ;;  %v2042_v25 = vpop.f32.mrf.mxu0 }
 0x2fb   :  { %1051 = vst.msk [vmem:[%s2120_s4 + $0x70] sm:$0xff] %vm1036_vm10, %v1034_v17  ;;  %v1713_v20 = vpop.f32.mrf.mxu1  ;;  %v1256_v55 = vadd.f32 %v2042_v25, %v1112_v22  ;;  %v1137_v25 = vpop.permute.xlu1 %1136 }
 0x2fc   :  { %vm1003_vm9 = vcmp.gt.f32.partialorder %v985_v19, 0.0  ;;  %v1019_v24 = vmul.f32 0.01, %v985_v19  ;;  %v1366_v26 = vadd.f32 %v1713_v20, %v1221_v16  ;;  %v1257_v31 = vpop.f32.mrf.mxu0 }
 0x2fd   :  { %v1360_v28 = vpop.f32.mrf.mxu1 }
 0x2fe   :  { %v1035_v30 = vsel %vm1003_vm9, %v985_v19, %v1019_v24  ;;  %vm1440_vm11 = vcmp.gt.f32.partialorder %v1366_v26, 0.0  ;;  %v1456_v63 = vmul.f32 0.01, %v1366_v26  ;;  %v1361_v32 = vadd.f32 %v1360_v28, %v1216_v21  ;;  %v1260_v37 = vpop.f32.mrf.mxu0 }
 0x2ff   :  { %1052 = vst.msk [vmem:[%s2120_s4 + $0x78] sm:$0xff] %vm1036_vm10, %v1035_v30  ;;  %v1716_v9 = vpop.f32.mrf.mxu1  ;;  %v1261_v60 = vadd.f32 %v1260_v37, %v1117_v46  ;;  %v1132_v30 = vpop.permute.xlu0 %1131 }
 0x300   :  { %v1472_v35 = vsel %vm1440_vm11, %v1366_v26, %v1456_v63  ;;  %vm1439_vm12 = vcmp.gt.f32.partialorder %v1361_v32, 0.0  ;;  %v1455_v36 = vmul.f32 0.01, %v1361_v32  ;;  %v1376_v38 = vadd.f32 %v1716_v9, %v1231_v27  ;;  %v1262_v42 = vpop.f32.mrf.mxu0 }
 0x301   :  { %1512 = vst.msk [vmem:[%s2120_s4 + $0x88] sm:$0xff] %vm1036_vm10, %v1472_v35  ;;  %v1370_v40 = vpop.f32.mrf.mxu1 }
 0x302   :  { %v1471_v41 = vsel %vm1439_vm12, %v1361_v32, %v1455_v36  ;;  %vm1442_vm13 = vcmp.gt.f32.partialorder %v1376_v38, 0.0  ;;  %v1458_v29 = vmul.f32 0.01, %v1376_v38  ;;  %v1371_v43 = vadd.f32 %v1370_v40, %v1226_v34  ;;  %v1265_v51 = vpop.f32.mrf.mxu0 }
 0x303   :  { %1511 = vst.msk [vmem:[%s2120_s4 + $0x80] sm:$0xff] %vm1036_vm10, %v1471_v41  ;;  %v1719_v45 = vpop.f32.mrf.mxu1  ;;  %v1266_v21 = vadd.f32 %v1265_v51, %v1122_v8 }
 0x304   :  { %v1474_v48 = vsel %vm1442_vm13, %v1376_v38, %v1458_v29  ;;  %vm1441_vm14 = vcmp.gt.f32.partialorder %v1371_v43, 0.0  ;;  %v1457_v50 = vmul.f32 0.01, %v1371_v43  ;;  %v1386_v52 = vadd.f32 %v1719_v45, %v1241_v39  ;;  %v1267_v56 = vpop.f32.mrf.mxu0  ;;  %v1142_v45 = vpop.permute.xlu0 %1141 }
 0x305   :  { %1514 = vst.msk [vmem:[%s2120_s4 + $0x98] sm:$0xff] %vm1036_vm10, %v1474_v48  ;;  %v1380_v49 = vpop.f32.mrf.mxu1  ;;  %v1147_v48 = vpop.permute.xlu1 %1146 }
 0x306   :  { %v1473_v47 = vsel %vm1441_vm14, %v1371_v43, %v1457_v50  ;;  %vm1444_vm15 = vcmp.gt.f32.partialorder %v1386_v52, 0.0  ;;  %v1460_v54 = vmul.f32 0.01, %v1386_v52  ;;  %v1381_v57 = vadd.f32 %v1380_v49, %v1236_v44  ;;  %v1270_v62 = vpop.f32.mrf.mxu0 }
 0x307   :  { %1513 = vst.msk [vmem:[%s2120_s4 + $0x90] sm:$0xff] %vm1036_vm10, %v1473_v47  ;;  %v1722_v59 = vpop.f32.mrf.mxu1  ;;  %v1271_v15 = vadd.f32 %v1270_v62, %v1127_v2 }
 0x308   :  { %v1476_v23 = vsel %vm1444_vm15, %v1386_v52, %v1460_v54  ;;  %vm1443_vm0 = vcmp.gt.f32.partialorder %v1381_v57, 0.0  ;;  %v1459_v61 = vmul.f32 0.01, %v1381_v57  ;;  %v1396_v0 = vadd.f32 %v1722_v59, %v1251_v53  ;;  %v1272_v6 = vpop.f32.mrf.mxu0 }
 0x309   :  { %1516 = vst.msk [vmem:[%s2120_s4 + $0xa8] sm:$0xff] %vm1036_vm10, %v1476_v23  ;;  %v1390_v1 = vpop.f32.mrf.mxu1 }
 0x30a   :  { %v1475_v3 = vsel %vm1443_vm0, %v1381_v57, %v1459_v61  ;;  %vm1446_vm1 = vcmp.gt.f32.partialorder %v1396_v0, 0.0  ;;  %v1462_v5 = vmul.f32 0.01, %v1396_v0  ;;  %v1391_v7 = vadd.f32 %v1390_v1, %v1246_v58  ;;  %v1275_v13 = vpop.f32.mrf.mxu0 }
 0x30b   :  { %1515 = vst.msk [vmem:[%s2120_s4 + $0xa0] sm:$0xff] %vm1036_vm10, %v1475_v3  ;;  %v1725_v10 = vpop.f32.mrf.mxu1  ;;  %v1276_v35 = vadd.f32 %v1275_v13, %v1132_v30 }
 0x30c   :  { %v1478_v11 = vsel %vm1446_vm1, %v1396_v0, %v1462_v5  ;;  %vm1445_vm2 = vcmp.gt.f32.partialorder %v1391_v7, 0.0  ;;  %v1461_v12 = vmul.f32 0.01, %v1391_v7  ;;  %v1406_v14 = vadd.f32 %v1725_v10, %v1261_v60  ;;  %v1277_v4 = vpop.f32.mrf.mxu0 }
 0x30d   :  { %1518 = vst.msk [vmem:[%s2120_s4 + $0xb8] sm:$0xff] %vm1036_vm10, %v1478_v11  ;;  %v1400_v16 = vpop.f32.mrf.mxu1 }
 0x30e   :  { %v1477_v17 = vsel %vm1445_vm2, %v1391_v7, %v1461_v12  ;;  %vm1448_vm3 = vcmp.gt.f32.partialorder %v1406_v14, 0.0  ;;  %v1464_v19 = vmul.f32 0.01, %v1406_v14  ;;  %v1401_v20 = vadd.f32 %v1400_v16, %v1256_v55  ;;  %v1280_v28 = vpop.f32.mrf.mxu0 }
 0x30f   :  { %1517 = vst.msk [vmem:[%s2120_s4 + $0xb0] sm:$0xff] %vm1036_vm10, %v1477_v17  ;;  %v1728_v24 = vpop.f32.mrf.mxu1  ;;  %v1281_v63 = vadd.f32 %v1280_v28, %v1137_v25 }
 0x310   :  { %v1480_v26 = vsel %vm1448_vm3, %v1406_v14, %v1464_v19  ;;  %vm1447_vm4 = vcmp.gt.f32.partialorder %v1401_v20, 0.0  ;;  %v1463_v27 = vmul.f32 0.01, %v1401_v20  ;;  %v1416_v18 = vadd.f32 %v1728_v24, %v1271_v15  ;;  %v1282_v34 = vpop.f32.mrf.mxu0 }
 0x311   :  { %1520 = vst.msk [vmem:[%s2120_s4 + $0xc8] sm:$0xff] %vm1036_vm10, %v1480_v26  ;;  %v1410_v31 = vpop.f32.mrf.mxu1 }
 0x312   :  { %v1479_v32 = vsel %vm1447_vm4, %v1401_v20, %v1463_v27  ;;  %vm1450_vm5 = vcmp.gt.f32.partialorder %v1416_v18, 0.0  ;;  %v1466_v33 = vmul.f32 0.01, %v1416_v18  ;;  %v1411_v9 = vadd.f32 %v1410_v31, %v1266_v21  ;;  %v1285_v39 = vpop.f32.mrf.mxu0 }
 0x313   :  { %1519 = vst.msk [vmem:[%s2120_s4 + $0xc0] sm:$0xff] %vm1036_vm10, %v1479_v32  ;;  %v1731_v36 = vpop.f32.mrf.mxu1  ;;  %v1286_v50 = vadd.f32 %v1285_v39, %v1142_v45 }
 0x314   :  { %v1482_v37 = vsel %vm1450_vm5, %v1416_v18, %v1466_v33  ;;  %vm1449_vm6 = vcmp.gt.f32.partialorder %v1411_v9, 0.0  ;;  %v1465_v38 = vmul.f32 0.01, %v1411_v9  ;;  %v1426_v40 = vadd.f32 %v1731_v36, %v1281_v63  ;;  %v1287_v43 = vpop.f32.mrf.mxu0 }
 0x315   :  { %1522 = vst.msk [vmem:[%s2120_s4 + $0xd8] sm:$0xff] %vm1036_vm10, %v1482_v37  ;;  %v1420_v41 = vpop.f32.mrf.mxu1 }
 0x316   :  { %v1481_v29 = vsel %vm1449_vm6, %v1411_v9, %v1465_v38  ;;  %vm1452_vm7 = vcmp.gt.f32.partialorder %v1426_v40, 0.0  ;;  %v1468_v42 = vmul.f32 0.01, %v1426_v40  ;;  %v1421_v44 = vadd.f32 %v1420_v41, %v1276_v35  ;;  %v1290_v22 = vpop.f32.mrf.mxu0 }
 0x317   :  { %1521 = vst.msk [vmem:[%s2120_s4 + $0xd0] sm:$0xff] %vm1036_vm10, %v1481_v29  ;;  %v1734_v46 = vpop.f32.mrf.mxu1  ;;  %v1291_v53 = vadd.f32 %v1290_v22, %v1147_v48 }
 0x318   :  { %v1484_v51 = vsel %vm1452_vm7, %v1426_v40, %v1468_v42  ;;  %vm1451_vm8 = vcmp.gt.f32.partialorder %v1421_v44, 0.0  ;;  %v1467_v52 = vmul.f32 0.01, %v1421_v44  ;;  %v1292_v56 = vpop.f32.mrf.mxu0 }
 0x319   :  { %1524 = vst.msk [vmem:[%s2120_s4 + $0xe8] sm:$0xff] %vm1036_vm10, %v1484_v51  ;;  %v1430_v49 = vpop.f32.mrf.mxu1  ;;  %v1436_v57 = vadd.f32 %v1734_v46, %v1291_v53 }
 0x31a   :  { %v1483_v47 = vsel %vm1451_vm8, %v1421_v44, %v1467_v52  ;;  %v1431_v54 = vadd.f32 %v1430_v49, %v1286_v50 }
 0x31b   :  { %1523 = vst.msk [vmem:[%s2120_s4 + $0xe0] sm:$0xff] %vm1036_vm10, %v1483_v47  ;;  %vm1454_vm11 = vcmp.gt.f32.partialorder %v1436_v57, 0.0  ;;  %v1470_v59 = vmul.f32 0.01, %v1436_v57 }
 0x31c   :  { %vm1453_vm9 = vcmp.gt.f32.partialorder %v1431_v54, 0.0  ;;  %v1469_v58 = vmul.f32 0.01, %v1431_v54 }
 0x31d   :  { %v1486_v61 = vsel %vm1454_vm11, %v1436_v57, %v1470_v59 }
 0x31e   :  { %v1485_v23 = vsel %vm1453_vm9, %v1431_v54, %v1469_v58  ;;  %1526 = vst.msk [vmem:[%s2120_s4 + $0xf8] sm:$0xff] %vm1036_vm10, %v1486_v61 }
 0x31f   :  { %1525 = vst.msk [vmem:[%s2120_s4 + $0xf0] sm:$0xff] %vm1036_vm10, %v1485_v23 }
 0x320   :  { %1508 = vsyncpa [#allocation4], 1 }

</bundles_post_ra>
